<compile_context>
chip_gen: v5e
topology: v5e:2x2
jax: 0.10.0
libtpu: 0.0.40
codegen_flags: <defaults>
</compile_context>

<pallas_src>
import jax
import jax.numpy as jnp
from jax import lax
from jax.experimental import pallas as pl
from jax.experimental.pallas import tpu as pltpu


def td_lstm_kernel(xl_ref, xr_ref, lenl_ref, lenr_ref,
                   wl_ref, bl_ref, wr_ref, br_ref,
                   wd_ref, bd_ref, out_ref):
    T, Bt, D = xl_ref.shape
    H4 = wl_ref.shape[1]
    H = H4 // 4

    # Hoisted out of the (unrolled) time loop: weights, biases, lengths.
    w_l = wl_ref[...]                                   # (D+H, 4H) bf16
    w_r = wr_ref[...]
    b_l = jnp.broadcast_to(bl_ref[...], (Bt, H4))       # (Bt, 4H) f32
    b_r = jnp.broadcast_to(br_ref[...], (Bt, H4))
    len_l = lenl_ref[...]                               # (Bt, 1) int32
    len_r = lenr_ref[...]

    def cell(x_t, h, c, w, b, mask):
        # fused [x_t | h] @ [Wih; Whh] : single bf16 MXU push, f32 accumulate
        z = jnp.concatenate([x_t, h.astype(jnp.bfloat16)], axis=-1)
        gates = jnp.dot(z, w, preferred_element_type=jnp.float32) + b
        # dense transcendentals over the full (Bt, 4H) vreg, slice afterwards
        sg = jax.nn.sigmoid(gates)
        tg = jnp.tanh(gates)
        i_g = sg[:, 0 * H:1 * H]
        f_g = sg[:, 1 * H:2 * H]
        g_g = tg[:, 2 * H:3 * H]
        o_g = sg[:, 3 * H:4 * H]
        c_new = f_g * c + i_g * g_g
        h_new = o_g * jnp.tanh(c_new)
        # advance state only while t < length ("hidden at last valid step")
        h = jnp.where(mask, h_new, h)
        c = jnp.where(mask, c_new, c)
        return h, c

    def step(t, carry):
        h_l, c_l, h_r, c_r = carry
        # left and right chains are independent -> interleaved for ILP
        h_l, c_l = cell(xl_ref[t], h_l, c_l, w_l, b_l, len_l > t)
        h_r, c_r = cell(xr_ref[t], h_r, c_r, w_r, b_r, len_r > t)
        return (h_l, c_l, h_r, c_r)

    z0 = jnp.zeros((Bt, H), jnp.float32)
    h_l, _, h_r, _ = lax.fori_loop(0, T, step, (z0, z0, z0, z0), unroll=True)

    # dense on cat(h_l, h_r) against a lane-dense, zero-padded (2H, C_pad) slab
    h_cat = jnp.concatenate([h_l, h_r], axis=-1).astype(jnp.bfloat16)
    out_ref[...] = (jnp.dot(h_cat, wd_ref[...],
                            preferred_element_type=jnp.float32)
                    + bd_ref[...])


def td_lstm_forward(x_left, x_right, params):
    """x_left/x_right: (B, T) int32 token ids (0 = pad)."""
    emb = params["embedding"]                     # (V, D) f32
    B, T = x_left.shape
    D = emb.shape[1]
    H = params["whh_l"].shape[1]
    C = params["w_dense"].shape[0]

    # lengths (count of non-pad tokens), like torch.sum(x != 0, dim=-1)
    len_l = jnp.sum(x_left != 0, axis=-1).astype(jnp.int32).reshape(B, 1)
    len_r = jnp.sum(x_right != 0, axis=-1).astype(jnp.int32).reshape(B, 1)

    # embedding lookup (plain JAX gather), time-major, bf16 matmul operands
    xl = jnp.transpose(jnp.take(emb, x_left, axis=0), (1, 0, 2))   # (T, B, D)
    xr = jnp.transpose(jnp.take(emb, x_right, axis=0), (1, 0, 2))
    xl = xl.astype(jnp.bfloat16)
    xr = xr.astype(jnp.bfloat16)

    # batch tiling (1-D grid axis, "parallel" -> both TensorCores on v7x)
    B_TILE = B if B <= 128 else 128
    Bp = pl.cdiv(B, B_TILE) * B_TILE
    if Bp != B:
        pad = Bp - B
        xl = jnp.pad(xl, ((0, 0), (0, pad), (0, 0)))
        xr = jnp.pad(xr, ((0, 0), (0, pad), (0, 0)))
        len_l = jnp.pad(len_l, ((0, pad), (0, 0)))
        len_r = jnp.pad(len_r, ((0, pad), (0, 0)))

    # fused per-LSTM weight [Wih; Whh] -> (D+H, 4H), PyTorch gate order [i,f,g,o]
    w_l = jnp.concatenate([params["wih_l"].T, params["whh_l"].T],
                          axis=0).astype(jnp.bfloat16)
    w_r = jnp.concatenate([params["wih_r"].T, params["whh_r"].T],
                          axis=0).astype(jnp.bfloat16)
    b_l = (params["bih_l"] + params["bhh_l"]).reshape(1, 4 * H).astype(jnp.float32)
    b_r = (params["bih_r"] + params["bhh_r"]).reshape(1, 4 * H).astype(jnp.float32)

    # dense weight zero-padded out to a lane-dense (2H, C_pad) slab
    C_pad = pl.cdiv(C, 128) * 128
    wd = jnp.pad(params["w_dense"].T,
                 ((0, 0), (0, C_pad - C))).astype(jnp.bfloat16)     # (2H, C_pad)
    bd = jnp.pad(params["b_dense"].reshape(1, C),
                 ((0, 0), (0, C_pad - C))).astype(jnp.float32)      # (1, C_pad)

    nb = Bp // B_TILE
    batch_x = pl.BlockSpec((T, B_TILE, D), lambda i: (0, i, 0))
    batch_len = pl.BlockSpec((B_TILE, 1), lambda i: (i, 0))

    def resident(shape):
        return pl.BlockSpec(shape, lambda i: (0,) * len(shape))

    out = pl.pallas_call(
        td_lstm_kernel,
        out_shape=jax.ShapeDtypeStruct((Bp, C_pad), jnp.float32),
        grid=(nb,),
        in_specs=[batch_x, batch_x, batch_len, batch_len,
                  resident((D + H, 4 * H)), resident((1, 4 * H)),
                  resident((D + H, 4 * H)), resident((1, 4 * H)),
                  resident((2 * H, C_pad)), resident((1, C_pad))],
        out_specs=pl.BlockSpec((B_TILE, C_pad), lambda i: (i, 0)),
        compiler_params=pltpu.CompilerParams(
            dimension_semantics=("parallel",)),
    )(xl, xr, len_l, len_r, w_l, b_l, w_r, b_r, wd, bd)

    return out[:B, :C]


def _init_params(key, vocab, D, H, C):
    ks = jax.random.split(key, 12)
    s = 0.1
    p = {
        "embedding": jax.random.normal(ks[0], (vocab, D), jnp.float32) * s,
        "wih_l": jax.random.normal(ks[1], (4 * H, D), jnp.float32) * s,
        "whh_l": jax.random.normal(ks[2], (4 * H, H), jnp.float32) * s,
        "bih_l": jax.random.normal(ks[3], (4 * H,), jnp.float32) * s,
        "bhh_l": jax.random.normal(ks[4], (4 * H,), jnp.float32) * s,
        "wih_r": jax.random.normal(ks[5], (4 * H, D), jnp.float32) * s,
        "whh_r": jax.random.normal(ks[6], (4 * H, H), jnp.float32) * s,
        "bih_r": jax.random.normal(ks[7], (4 * H,), jnp.float32) * s,
        "bhh_r": jax.random.normal(ks[8], (4 * H,), jnp.float32) * s,
        "w_dense": jax.random.normal(ks[9], (C, 2 * H), jnp.float32) * s,
        "b_dense": jax.random.normal(ks[10], (C,), jnp.float32) * s,
    }
    # zero the pad row like a typical pretrained embedding matrix
    p["embedding"] = p["embedding"].at[0].set(0.0)
    return p


if __name__ == "__main__":
    # small shapes: batch=2, seq=8, embed/input_dim=32, hidden=32, num_class=3
    B, T, D, H, C, VOCAB = 2, 8, 32, 32, 3, 50
    key = jax.random.PRNGKey(0)
    kp, kl, kr = jax.random.split(key, 3)
    params = _init_params(kp, VOCAB, D, H, C)

    # token ids with trailing padding (0) to exercise the length masking
    x_left = jax.random.randint(kl, (B, T), 1, VOCAB, dtype=jnp.int32)
    x_right = jax.random.randint(kr, (B, T), 1, VOCAB, dtype=jnp.int32)
    x_left = x_left.at[0, 5:].set(0)    # len 5
    x_left = x_left.at[1, 7:].set(0)    # len 7
    x_right = x_right.at[0, 3:].set(0)  # len 3
    # row 1 of x_right stays full length T

    out = td_lstm_forward(x_left, x_right, params)
    jax.block_until_ready(out)
    assert out.shape == (B, C) and out.dtype == jnp.float32
    print("KERNEL_OK")
</pallas_src>

<mosaic_0001>
module attributes {stable_mosaic.version = 11 : i64} {
  func.func @td_lstm_kernel(%arg0: i32, %arg1: memref<8x2x32xbf16, #tpu.memory_space<vmem>>, %arg2: memref<8x2x32xbf16, #tpu.memory_space<vmem>>, %arg3: memref<2x1xi32, #tpu.memory_space<vmem>>, %arg4: memref<2x1xi32, #tpu.memory_space<vmem>>, %arg5: memref<64x128xbf16, #tpu.memory_space<vmem>>, %arg6: memref<1x128xf32, #tpu.memory_space<vmem>>, %arg7: memref<64x128xbf16, #tpu.memory_space<vmem>>, %arg8: memref<1x128xf32, #tpu.memory_space<vmem>>, %arg9: memref<64x128xbf16, #tpu.memory_space<vmem>>, %arg10: memref<1x128xf32, #tpu.memory_space<vmem>>, %arg11: memref<2x128xf32, #tpu.memory_space<vmem>>) attributes {dimension_semantics = [#tpu.dimension_semantics<parallel>], iteration_bounds = array<i64: 1>, scalar_prefetch = 0 : i64, scratch_operands = 0 : i64, tpu.core_type = #tpu.core_type<tc>, window_params = [{transform_indices = @transform_0, window_bounds = array<i64: 8, 2, 32>}, {transform_indices = @transform_1, window_bounds = array<i64: 8, 2, 32>}, {transform_indices = @transform_2, window_bounds = array<i64: 2, 1>}, {transform_indices = @transform_3, window_bounds = array<i64: 2, 1>}, {pipeline_mode = #tpu.pipeline_mode<synchronous>, transform_indices = @transform_4, window_bounds = array<i64: 64, 128>}, {pipeline_mode = #tpu.pipeline_mode<synchronous>, transform_indices = @transform_5, window_bounds = array<i64: 1, 128>}, {pipeline_mode = #tpu.pipeline_mode<synchronous>, transform_indices = @transform_6, window_bounds = array<i64: 64, 128>}, {pipeline_mode = #tpu.pipeline_mode<synchronous>, transform_indices = @transform_7, window_bounds = array<i64: 1, 128>}, {pipeline_mode = #tpu.pipeline_mode<synchronous>, transform_indices = @transform_8, window_bounds = array<i64: 64, 128>}, {pipeline_mode = #tpu.pipeline_mode<synchronous>, transform_indices = @transform_9, window_bounds = array<i64: 1, 128>}, {transform_indices = @transform_10, window_bounds = array<i64: 2, 128>}]} {
    %c0 = arith.constant 0 : index
    %c0_0 = arith.constant 0 : index
    %0 = vector.load %arg5[%c0, %c0_0] : memref<64x128xbf16, #tpu.memory_space<vmem>>, vector<64x128xbf16>
    %c0_1 = arith.constant 0 : index
    %c0_2 = arith.constant 0 : index
    %1 = vector.load %arg7[%c0_1, %c0_2] : memref<64x128xbf16, #tpu.memory_space<vmem>>, vector<64x128xbf16>
    %c0_3 = arith.constant 0 : index
    %c0_4 = arith.constant 0 : index
    %2 = vector.load %arg6[%c0_3, %c0_4] : memref<1x128xf32, #tpu.memory_space<vmem>>, vector<1x128xf32>
    %3 = vector.shape_cast %2 : vector<1x128xf32> to vector<1x128xf32>
    %4 = vector.broadcast %3 : vector<1x128xf32> to vector<2x128xf32>
    %c0_5 = arith.constant 0 : index
    %c0_6 = arith.constant 0 : index
    %5 = vector.load %arg8[%c0_5, %c0_6] : memref<1x128xf32, #tpu.memory_space<vmem>>, vector<1x128xf32>
    %6 = vector.shape_cast %5 : vector<1x128xf32> to vector<1x128xf32>
    %7 = vector.broadcast %6 : vector<1x128xf32> to vector<2x128xf32>
    %c0_7 = arith.constant 0 : index
    %c0_8 = arith.constant 0 : index
    %8 = vector.load %arg3[%c0_7, %c0_8] : memref<2x1xi32, #tpu.memory_space<vmem>>, vector<2x1xi32>
    %c0_9 = arith.constant 0 : index
    %c0_10 = arith.constant 0 : index
    %9 = vector.load %arg4[%c0_9, %c0_10] : memref<2x1xi32, #tpu.memory_space<vmem>>, vector<2x1xi32>
    %cst = arith.constant 0.000000e+00 : f32
    %10 = vector.broadcast %cst : f32 to vector<2x32xf32>
    %c0_i32 = arith.constant 0 : i32
    %11 = arith.index_cast %c0_i32 : i32 to index
    %c0_11 = arith.constant 0 : index
    %c0_12 = arith.constant 0 : index
    %12 = vector.load %arg1[%11, %c0_11, %c0_12] : memref<8x2x32xbf16, #tpu.memory_space<vmem>>, vector<1x2x32xbf16>
    %13 = vector.shape_cast %12 : vector<1x2x32xbf16> to vector<2x32xbf16>
    %14 = vector.broadcast %c0_i32 : i32 to vector<2x1xi32>
    %15 = arith.cmpi sgt, %8, %14 : vector<2x1xi32>
    %16 = arith.truncf %10 : vector<2x32xf32> to vector<2x32xbf16>
    %17 = tpu.concatenate %13, %16 in 1 : vector<2x32xbf16>, vector<2x32xbf16> -> vector<2x64xbf16>
    %cst_13 = arith.constant dense<0.000000e+00> : vector<2x128xf32>
    %18 = tpu.matmul %17, %0, %cst_13 {dimension_numbers = #tpu.dot_dimension_numbers<[1], [0], [0], [1], [0, 0, 1, 1], [], []>} : vector<2x64xbf16>, vector<64x128xbf16>, vector<2x128xf32> -> vector<2x128xf32>
    %19 = arith.addf %18, %4 : vector<2x128xf32>
    %20 = arith.negf %19 : vector<2x128xf32>
    %21 = math.exp %20 : vector<2x128xf32>
    %cst_14 = arith.constant 1.000000e+00 : f32
    %22 = vector.broadcast %cst_14 : f32 to vector<2x128xf32>
    %23 = arith.addf %22, %21 : vector<2x128xf32>
    %24 = arith.divf %22, %23 : vector<2x128xf32>
    %25 = math.tanh %19 : vector<2x128xf32>
    %26 = vector.extract_strided_slice %24 {offsets = [0, 0], sizes = [2, 32], strides = [1, 1]} : vector<2x128xf32> to vector<2x32xf32>
    %27 = vector.extract_strided_slice %24 {offsets = [0, 32], sizes = [2, 32], strides = [1, 1]} : vector<2x128xf32> to vector<2x32xf32>
    %28 = vector.extract_strided_slice %25 {offsets = [0, 64], sizes = [2, 32], strides = [1, 1]} : vector<2x128xf32> to vector<2x32xf32>
    %29 = vector.extract_strided_slice %24 {offsets = [0, 96], sizes = [2, 32], strides = [1, 1]} : vector<2x128xf32> to vector<2x32xf32>
    %30 = arith.mulf %27, %10 : vector<2x32xf32>
    %31 = arith.mulf %26, %28 : vector<2x32xf32>
    %32 = arith.addf %30, %31 : vector<2x32xf32>
    %33 = math.tanh %32 : vector<2x32xf32>
    %34 = arith.mulf %29, %33 : vector<2x32xf32>
    %35 = vector.shape_cast %15 : vector<2x1xi1> to vector<2x1xi1>
    %36 = vector.broadcast %35 : vector<2x1xi1> to vector<2x32xi1>
    %37 = arith.select %36, %34, %10 : vector<2x32xi1>, vector<2x32xf32>
    %38 = vector.shape_cast %15 : vector<2x1xi1> to vector<2x1xi1>
    %39 = vector.broadcast %38 : vector<2x1xi1> to vector<2x32xi1>
    %40 = arith.select %39, %32, %10 : vector<2x32xi1>, vector<2x32xf32>
    %41 = arith.index_cast %c0_i32 : i32 to index
    %c0_15 = arith.constant 0 : index
    %c0_16 = arith.constant 0 : index
    %42 = vector.load %arg2[%41, %c0_15, %c0_16] : memref<8x2x32xbf16, #tpu.memory_space<vmem>>, vector<1x2x32xbf16>
    %43 = vector.shape_cast %42 : vector<1x2x32xbf16> to vector<2x32xbf16>
    %44 = vector.broadcast %c0_i32 : i32 to vector<2x1xi32>
    %45 = arith.cmpi sgt, %9, %44 : vector<2x1xi32>
    %46 = arith.truncf %10 : vector<2x32xf32> to vector<2x32xbf16>
    %47 = tpu.concatenate %43, %46 in 1 : vector<2x32xbf16>, vector<2x32xbf16> -> vector<2x64xbf16>
    %cst_17 = arith.constant dense<0.000000e+00> : vector<2x128xf32>
    %48 = tpu.matmul %47, %1, %cst_17 {dimension_numbers = #tpu.dot_dimension_numbers<[1], [0], [0], [1], [0, 0, 1, 1], [], []>} : vector<2x64xbf16>, vector<64x128xbf16>, vector<2x128xf32> -> vector<2x128xf32>
    %49 = arith.addf %48, %7 : vector<2x128xf32>
    %50 = arith.negf %49 : vector<2x128xf32>
    %51 = math.exp %50 : vector<2x128xf32>
    %cst_18 = arith.constant 1.000000e+00 : f32
    %52 = vector.broadcast %cst_18 : f32 to vector<2x128xf32>
    %53 = arith.addf %52, %51 : vector<2x128xf32>
    %54 = arith.divf %52, %53 : vector<2x128xf32>
    %55 = math.tanh %49 : vector<2x128xf32>
    %56 = vector.extract_strided_slice %54 {offsets = [0, 0], sizes = [2, 32], strides = [1, 1]} : vector<2x128xf32> to vector<2x32xf32>
    %57 = vector.extract_strided_slice %54 {offsets = [0, 32], sizes = [2, 32], strides = [1, 1]} : vector<2x128xf32> to vector<2x32xf32>
    %58 = vector.extract_strided_slice %55 {offsets = [0, 64], sizes = [2, 32], strides = [1, 1]} : vector<2x128xf32> to vector<2x32xf32>
    %59 = vector.extract_strided_slice %54 {offsets = [0, 96], sizes = [2, 32], strides = [1, 1]} : vector<2x128xf32> to vector<2x32xf32>
    %60 = arith.mulf %57, %10 : vector<2x32xf32>
    %61 = arith.mulf %56, %58 : vector<2x32xf32>
    %62 = arith.addf %60, %61 : vector<2x32xf32>
    %63 = math.tanh %62 : vector<2x32xf32>
    %64 = arith.mulf %59, %63 : vector<2x32xf32>
    %65 = vector.shape_cast %45 : vector<2x1xi1> to vector<2x1xi1>
    %66 = vector.broadcast %65 : vector<2x1xi1> to vector<2x32xi1>
    %67 = arith.select %66, %64, %10 : vector<2x32xi1>, vector<2x32xf32>
    %68 = vector.shape_cast %45 : vector<2x1xi1> to vector<2x1xi1>
    %69 = vector.broadcast %68 : vector<2x1xi1> to vector<2x32xi1>
    %70 = arith.select %69, %62, %10 : vector<2x32xi1>, vector<2x32xf32>
    %c1_i32 = arith.constant 1 : i32
    %71 = arith.index_cast %c1_i32 : i32 to index
    %c0_19 = arith.constant 0 : index
    %c0_20 = arith.constant 0 : index
    %72 = vector.load %arg1[%71, %c0_19, %c0_20] : memref<8x2x32xbf16, #tpu.memory_space<vmem>>, vector<1x2x32xbf16>
    %73 = vector.shape_cast %72 : vector<1x2x32xbf16> to vector<2x32xbf16>
    %74 = vector.broadcast %c1_i32 : i32 to vector<2x1xi32>
    %75 = arith.cmpi sgt, %8, %74 : vector<2x1xi32>
    %76 = arith.truncf %37 : vector<2x32xf32> to vector<2x32xbf16>
    %77 = tpu.concatenate %73, %76 in 1 : vector<2x32xbf16>, vector<2x32xbf16> -> vector<2x64xbf16>
    %cst_21 = arith.constant dense<0.000000e+00> : vector<2x128xf32>
    %78 = tpu.matmul %77, %0, %cst_21 {dimension_numbers = #tpu.dot_dimension_numbers<[1], [0], [0], [1], [0, 0, 1, 1], [], []>} : vector<2x64xbf16>, vector<64x128xbf16>, vector<2x128xf32> -> vector<2x128xf32>
    %79 = arith.addf %78, %4 : vector<2x128xf32>
    %80 = arith.negf %79 : vector<2x128xf32>
    %81 = math.exp %80 : vector<2x128xf32>
    %cst_22 = arith.constant 1.000000e+00 : f32
    %82 = vector.broadcast %cst_22 : f32 to vector<2x128xf32>
    %83 = arith.addf %82, %81 : vector<2x128xf32>
    %84 = arith.divf %82, %83 : vector<2x128xf32>
    %85 = math.tanh %79 : vector<2x128xf32>
    %86 = vector.extract_strided_slice %84 {offsets = [0, 0], sizes = [2, 32], strides = [1, 1]} : vector<2x128xf32> to vector<2x32xf32>
    %87 = vector.extract_strided_slice %84 {offsets = [0, 32], sizes = [2, 32], strides = [1, 1]} : vector<2x128xf32> to vector<2x32xf32>
    %88 = vector.extract_strided_slice %85 {offsets = [0, 64], sizes = [2, 32], strides = [1, 1]} : vector<2x128xf32> to vector<2x32xf32>
    %89 = vector.extract_strided_slice %84 {offsets = [0, 96], sizes = [2, 32], strides = [1, 1]} : vector<2x128xf32> to vector<2x32xf32>
    %90 = arith.mulf %87, %40 : vector<2x32xf32>
    %91 = arith.mulf %86, %88 : vector<2x32xf32>
    %92 = arith.addf %90, %91 : vector<2x32xf32>
    %93 = math.tanh %92 : vector<2x32xf32>
    %94 = arith.mulf %89, %93 : vector<2x32xf32>
    %95 = vector.shape_cast %75 : vector<2x1xi1> to vector<2x1xi1>
    %96 = vector.broadcast %95 : vector<2x1xi1> to vector<2x32xi1>
    %97 = arith.select %96, %94, %37 : vector<2x32xi1>, vector<2x32xf32>
    %98 = vector.shape_cast %75 : vector<2x1xi1> to vector<2x1xi1>
    %99 = vector.broadcast %98 : vector<2x1xi1> to vector<2x32xi1>
    %100 = arith.select %99, %92, %40 : vector<2x32xi1>, vector<2x32xf32>
    %101 = arith.index_cast %c1_i32 : i32 to index
    %c0_23 = arith.constant 0 : index
    %c0_24 = arith.constant 0 : index
    %102 = vector.load %arg2[%101, %c0_23, %c0_24] : memref<8x2x32xbf16, #tpu.memory_space<vmem>>, vector<1x2x32xbf16>
    %103 = vector.shape_cast %102 : vector<1x2x32xbf16> to vector<2x32xbf16>
    %104 = vector.broadcast %c1_i32 : i32 to vector<2x1xi32>
    %105 = arith.cmpi sgt, %9, %104 : vector<2x1xi32>
    %106 = arith.truncf %67 : vector<2x32xf32> to vector<2x32xbf16>
    %107 = tpu.concatenate %103, %106 in 1 : vector<2x32xbf16>, vector<2x32xbf16> -> vector<2x64xbf16>
    %cst_25 = arith.constant dense<0.000000e+00> : vector<2x128xf32>
    %108 = tpu.matmul %107, %1, %cst_25 {dimension_numbers = #tpu.dot_dimension_numbers<[1], [0], [0], [1], [0, 0, 1, 1], [], []>} : vector<2x64xbf16>, vector<64x128xbf16>, vector<2x128xf32> -> vector<2x128xf32>
    %109 = arith.addf %108, %7 : vector<2x128xf32>
    %110 = arith.negf %109 : vector<2x128xf32>
    %111 = math.exp %110 : vector<2x128xf32>
    %cst_26 = arith.constant 1.000000e+00 : f32
    %112 = vector.broadcast %cst_26 : f32 to vector<2x128xf32>
    %113 = arith.addf %112, %111 : vector<2x128xf32>
    %114 = arith.divf %112, %113 : vector<2x128xf32>
    %115 = math.tanh %109 : vector<2x128xf32>
    %116 = vector.extract_strided_slice %114 {offsets = [0, 0], sizes = [2, 32], strides = [1, 1]} : vector<2x128xf32> to vector<2x32xf32>
    %117 = vector.extract_strided_slice %114 {offsets = [0, 32], sizes = [2, 32], strides = [1, 1]} : vector<2x128xf32> to vector<2x32xf32>
    %118 = vector.extract_strided_slice %115 {offsets = [0, 64], sizes = [2, 32], strides = [1, 1]} : vector<2x128xf32> to vector<2x32xf32>
    %119 = vector.extract_strided_slice %114 {offsets = [0, 96], sizes = [2, 32], strides = [1, 1]} : vector<2x128xf32> to vector<2x32xf32>
    %120 = arith.mulf %117, %70 : vector<2x32xf32>
    %121 = arith.mulf %116, %118 : vector<2x32xf32>
    %122 = arith.addf %120, %121 : vector<2x32xf32>
    %123 = math.tanh %122 : vector<2x32xf32>
    %124 = arith.mulf %119, %123 : vector<2x32xf32>
    %125 = vector.shape_cast %105 : vector<2x1xi1> to vector<2x1xi1>
    %126 = vector.broadcast %125 : vector<2x1xi1> to vector<2x32xi1>
    %127 = arith.select %126, %124, %67 : vector<2x32xi1>, vector<2x32xf32>
    %128 = vector.shape_cast %105 : vector<2x1xi1> to vector<2x1xi1>
    %129 = vector.broadcast %128 : vector<2x1xi1> to vector<2x32xi1>
    %130 = arith.select %129, %122, %70 : vector<2x32xi1>, vector<2x32xf32>
    %c2_i32 = arith.constant 2 : i32
    %131 = arith.index_cast %c2_i32 : i32 to index
    %c0_27 = arith.constant 0 : index
    %c0_28 = arith.constant 0 : index
    %132 = vector.load %arg1[%131, %c0_27, %c0_28] : memref<8x2x32xbf16, #tpu.memory_space<vmem>>, vector<1x2x32xbf16>
    %133 = vector.shape_cast %132 : vector<1x2x32xbf16> to vector<2x32xbf16>
    %134 = vector.broadcast %c2_i32 : i32 to vector<2x1xi32>
    %135 = arith.cmpi sgt, %8, %134 : vector<2x1xi32>
    %136 = arith.truncf %97 : vector<2x32xf32> to vector<2x32xbf16>
    %137 = tpu.concatenate %133, %136 in 1 : vector<2x32xbf16>, vector<2x32xbf16> -> vector<2x64xbf16>
    %cst_29 = arith.constant dense<0.000000e+00> : vector<2x128xf32>
    %138 = tpu.matmul %137, %0, %cst_29 {dimension_numbers = #tpu.dot_dimension_numbers<[1], [0], [0], [1], [0, 0, 1, 1], [], []>} : vector<2x64xbf16>, vector<64x128xbf16>, vector<2x128xf32> -> vector<2x128xf32>
    %139 = arith.addf %138, %4 : vector<2x128xf32>
    %140 = arith.negf %139 : vector<2x128xf32>
    %141 = math.exp %140 : vector<2x128xf32>
    %cst_30 = arith.constant 1.000000e+00 : f32
    %142 = vector.broadcast %cst_30 : f32 to vector<2x128xf32>
    %143 = arith.addf %142, %141 : vector<2x128xf32>
    %144 = arith.divf %142, %143 : vector<2x128xf32>
    %145 = math.tanh %139 : vector<2x128xf32>
    %146 = vector.extract_strided_slice %144 {offsets = [0, 0], sizes = [2, 32], strides = [1, 1]} : vector<2x128xf32> to vector<2x32xf32>
    %147 = vector.extract_strided_slice %144 {offsets = [0, 32], sizes = [2, 32], strides = [1, 1]} : vector<2x128xf32> to vector<2x32xf32>
    %148 = vector.extract_strided_slice %145 {offsets = [0, 64], sizes = [2, 32], strides = [1, 1]} : vector<2x128xf32> to vector<2x32xf32>
    %149 = vector.extract_strided_slice %144 {offsets = [0, 96], sizes = [2, 32], strides = [1, 1]} : vector<2x128xf32> to vector<2x32xf32>
    %150 = arith.mulf %147, %100 : vector<2x32xf32>
    %151 = arith.mulf %146, %148 : vector<2x32xf32>
    %152 = arith.addf %150, %151 : vector<2x32xf32>
    %153 = math.tanh %152 : vector<2x32xf32>
    %154 = arith.mulf %149, %153 : vector<2x32xf32>
    %155 = vector.shape_cast %135 : vector<2x1xi1> to vector<2x1xi1>
    %156 = vector.broadcast %155 : vector<2x1xi1> to vector<2x32xi1>
    %157 = arith.select %156, %154, %97 : vector<2x32xi1>, vector<2x32xf32>
    %158 = vector.shape_cast %135 : vector<2x1xi1> to vector<2x1xi1>
    %159 = vector.broadcast %158 : vector<2x1xi1> to vector<2x32xi1>
    %160 = arith.select %159, %152, %100 : vector<2x32xi1>, vector<2x32xf32>
    %161 = arith.index_cast %c2_i32 : i32 to index
    %c0_31 = arith.constant 0 : index
    %c0_32 = arith.constant 0 : index
    %162 = vector.load %arg2[%161, %c0_31, %c0_32] : memref<8x2x32xbf16, #tpu.memory_space<vmem>>, vector<1x2x32xbf16>
    %163 = vector.shape_cast %162 : vector<1x2x32xbf16> to vector<2x32xbf16>
    %164 = vector.broadcast %c2_i32 : i32 to vector<2x1xi32>
    %165 = arith.cmpi sgt, %9, %164 : vector<2x1xi32>
    %166 = arith.truncf %127 : vector<2x32xf32> to vector<2x32xbf16>
    %167 = tpu.concatenate %163, %166 in 1 : vector<2x32xbf16>, vector<2x32xbf16> -> vector<2x64xbf16>
    %cst_33 = arith.constant dense<0.000000e+00> : vector<2x128xf32>
    %168 = tpu.matmul %167, %1, %cst_33 {dimension_numbers = #tpu.dot_dimension_numbers<[1], [0], [0], [1], [0, 0, 1, 1], [], []>} : vector<2x64xbf16>, vector<64x128xbf16>, vector<2x128xf32> -> vector<2x128xf32>
    %169 = arith.addf %168, %7 : vector<2x128xf32>
    %170 = arith.negf %169 : vector<2x128xf32>
    %171 = math.exp %170 : vector<2x128xf32>
    %cst_34 = arith.constant 1.000000e+00 : f32
    %172 = vector.broadcast %cst_34 : f32 to vector<2x128xf32>
    %173 = arith.addf %172, %171 : vector<2x128xf32>
    %174 = arith.divf %172, %173 : vector<2x128xf32>
    %175 = math.tanh %169 : vector<2x128xf32>
    %176 = vector.extract_strided_slice %174 {offsets = [0, 0], sizes = [2, 32], strides = [1, 1]} : vector<2x128xf32> to vector<2x32xf32>
    %177 = vector.extract_strided_slice %174 {offsets = [0, 32], sizes = [2, 32], strides = [1, 1]} : vector<2x128xf32> to vector<2x32xf32>
    %178 = vector.extract_strided_slice %175 {offsets = [0, 64], sizes = [2, 32], strides = [1, 1]} : vector<2x128xf32> to vector<2x32xf32>
    %179 = vector.extract_strided_slice %174 {offsets = [0, 96], sizes = [2, 32], strides = [1, 1]} : vector<2x128xf32> to vector<2x32xf32>
    %180 = arith.mulf %177, %130 : vector<2x32xf32>
    %181 = arith.mulf %176, %178 : vector<2x32xf32>
    %182 = arith.addf %180, %181 : vector<2x32xf32>
    %183 = math.tanh %182 : vector<2x32xf32>
    %184 = arith.mulf %179, %183 : vector<2x32xf32>
    %185 = vector.shape_cast %165 : vector<2x1xi1> to vector<2x1xi1>
    %186 = vector.broadcast %185 : vector<2x1xi1> to vector<2x32xi1>
    %187 = arith.select %186, %184, %127 : vector<2x32xi1>, vector<2x32xf32>
    %188 = vector.shape_cast %165 : vector<2x1xi1> to vector<2x1xi1>
    %189 = vector.broadcast %188 : vector<2x1xi1> to vector<2x32xi1>
    %190 = arith.select %189, %182, %130 : vector<2x32xi1>, vector<2x32xf32>
    %c3_i32 = arith.constant 3 : i32
    %191 = arith.index_cast %c3_i32 : i32 to index
    %c0_35 = arith.constant 0 : index
    %c0_36 = arith.constant 0 : index
    %192 = vector.load %arg1[%191, %c0_35, %c0_36] : memref<8x2x32xbf16, #tpu.memory_space<vmem>>, vector<1x2x32xbf16>
    %193 = vector.shape_cast %192 : vector<1x2x32xbf16> to vector<2x32xbf16>
    %194 = vector.broadcast %c3_i32 : i32 to vector<2x1xi32>
    %195 = arith.cmpi sgt, %8, %194 : vector<2x1xi32>
    %196 = arith.truncf %157 : vector<2x32xf32> to vector<2x32xbf16>
    %197 = tpu.concatenate %193, %196 in 1 : vector<2x32xbf16>, vector<2x32xbf16> -> vector<2x64xbf16>
    %cst_37 = arith.constant dense<0.000000e+00> : vector<2x128xf32>
    %198 = tpu.matmul %197, %0, %cst_37 {dimension_numbers = #tpu.dot_dimension_numbers<[1], [0], [0], [1], [0, 0, 1, 1], [], []>} : vector<2x64xbf16>, vector<64x128xbf16>, vector<2x128xf32> -> vector<2x128xf32>
    %199 = arith.addf %198, %4 : vector<2x128xf32>
    %200 = arith.negf %199 : vector<2x128xf32>
    %201 = math.exp %200 : vector<2x128xf32>
    %cst_38 = arith.constant 1.000000e+00 : f32
    %202 = vector.broadcast %cst_38 : f32 to vector<2x128xf32>
    %203 = arith.addf %202, %201 : vector<2x128xf32>
    %204 = arith.divf %202, %203 : vector<2x128xf32>
    %205 = math.tanh %199 : vector<2x128xf32>
    %206 = vector.extract_strided_slice %204 {offsets = [0, 0], sizes = [2, 32], strides = [1, 1]} : vector<2x128xf32> to vector<2x32xf32>
    %207 = vector.extract_strided_slice %204 {offsets = [0, 32], sizes = [2, 32], strides = [1, 1]} : vector<2x128xf32> to vector<2x32xf32>
    %208 = vector.extract_strided_slice %205 {offsets = [0, 64], sizes = [2, 32], strides = [1, 1]} : vector<2x128xf32> to vector<2x32xf32>
    %209 = vector.extract_strided_slice %204 {offsets = [0, 96], sizes = [2, 32], strides = [1, 1]} : vector<2x128xf32> to vector<2x32xf32>
    %210 = arith.mulf %207, %160 : vector<2x32xf32>
    %211 = arith.mulf %206, %208 : vector<2x32xf32>
    %212 = arith.addf %210, %211 : vector<2x32xf32>
    %213 = math.tanh %212 : vector<2x32xf32>
    %214 = arith.mulf %209, %213 : vector<2x32xf32>
    %215 = vector.shape_cast %195 : vector<2x1xi1> to vector<2x1xi1>
    %216 = vector.broadcast %215 : vector<2x1xi1> to vector<2x32xi1>
    %217 = arith.select %216, %214, %157 : vector<2x32xi1>, vector<2x32xf32>
    %218 = vector.shape_cast %195 : vector<2x1xi1> to vector<2x1xi1>
    %219 = vector.broadcast %218 : vector<2x1xi1> to vector<2x32xi1>
    %220 = arith.select %219, %212, %160 : vector<2x32xi1>, vector<2x32xf32>
    %221 = arith.index_cast %c3_i32 : i32 to index
    %c0_39 = arith.constant 0 : index
    %c0_40 = arith.constant 0 : index
    %222 = vector.load %arg2[%221, %c0_39, %c0_40] : memref<8x2x32xbf16, #tpu.memory_space<vmem>>, vector<1x2x32xbf16>
    %223 = vector.shape_cast %222 : vector<1x2x32xbf16> to vector<2x32xbf16>
    %224 = vector.broadcast %c3_i32 : i32 to vector<2x1xi32>
    %225 = arith.cmpi sgt, %9, %224 : vector<2x1xi32>
    %226 = arith.truncf %187 : vector<2x32xf32> to vector<2x32xbf16>
    %227 = tpu.concatenate %223, %226 in 1 : vector<2x32xbf16>, vector<2x32xbf16> -> vector<2x64xbf16>
    %cst_41 = arith.constant dense<0.000000e+00> : vector<2x128xf32>
    %228 = tpu.matmul %227, %1, %cst_41 {dimension_numbers = #tpu.dot_dimension_numbers<[1], [0], [0], [1], [0, 0, 1, 1], [], []>} : vector<2x64xbf16>, vector<64x128xbf16>, vector<2x128xf32> -> vector<2x128xf32>
    %229 = arith.addf %228, %7 : vector<2x128xf32>
    %230 = arith.negf %229 : vector<2x128xf32>
    %231 = math.exp %230 : vector<2x128xf32>
    %cst_42 = arith.constant 1.000000e+00 : f32
    %232 = vector.broadcast %cst_42 : f32 to vector<2x128xf32>
    %233 = arith.addf %232, %231 : vector<2x128xf32>
    %234 = arith.divf %232, %233 : vector<2x128xf32>
    %235 = math.tanh %229 : vector<2x128xf32>
    %236 = vector.extract_strided_slice %234 {offsets = [0, 0], sizes = [2, 32], strides = [1, 1]} : vector<2x128xf32> to vector<2x32xf32>
    %237 = vector.extract_strided_slice %234 {offsets = [0, 32], sizes = [2, 32], strides = [1, 1]} : vector<2x128xf32> to vector<2x32xf32>
    %238 = vector.extract_strided_slice %235 {offsets = [0, 64], sizes = [2, 32], strides = [1, 1]} : vector<2x128xf32> to vector<2x32xf32>
    %239 = vector.extract_strided_slice %234 {offsets = [0, 96], sizes = [2, 32], strides = [1, 1]} : vector<2x128xf32> to vector<2x32xf32>
    %240 = arith.mulf %237, %190 : vector<2x32xf32>
    %241 = arith.mulf %236, %238 : vector<2x32xf32>
    %242 = arith.addf %240, %241 : vector<2x32xf32>
    %243 = math.tanh %242 : vector<2x32xf32>
    %244 = arith.mulf %239, %243 : vector<2x32xf32>
    %245 = vector.shape_cast %225 : vector<2x1xi1> to vector<2x1xi1>
    %246 = vector.broadcast %245 : vector<2x1xi1> to vector<2x32xi1>
    %247 = arith.select %246, %244, %187 : vector<2x32xi1>, vector<2x32xf32>
    %248 = vector.shape_cast %225 : vector<2x1xi1> to vector<2x1xi1>
    %249 = vector.broadcast %248 : vector<2x1xi1> to vector<2x32xi1>
    %250 = arith.select %249, %242, %190 : vector<2x32xi1>, vector<2x32xf32>
    %c4_i32 = arith.constant 4 : i32
    %251 = arith.index_cast %c4_i32 : i32 to index
    %c0_43 = arith.constant 0 : index
    %c0_44 = arith.constant 0 : index
    %252 = vector.load %arg1[%251, %c0_43, %c0_44] : memref<8x2x32xbf16, #tpu.memory_space<vmem>>, vector<1x2x32xbf16>
    %253 = vector.shape_cast %252 : vector<1x2x32xbf16> to vector<2x32xbf16>
    %254 = vector.broadcast %c4_i32 : i32 to vector<2x1xi32>
    %255 = arith.cmpi sgt, %8, %254 : vector<2x1xi32>
    %256 = arith.truncf %217 : vector<2x32xf32> to vector<2x32xbf16>
    %257 = tpu.concatenate %253, %256 in 1 : vector<2x32xbf16>, vector<2x32xbf16> -> vector<2x64xbf16>
    %cst_45 = arith.constant dense<0.000000e+00> : vector<2x128xf32>
    %258 = tpu.matmul %257, %0, %cst_45 {dimension_numbers = #tpu.dot_dimension_numbers<[1], [0], [0], [1], [0, 0, 1, 1], [], []>} : vector<2x64xbf16>, vector<64x128xbf16>, vector<2x128xf32> -> vector<2x128xf32>
    %259 = arith.addf %258, %4 : vector<2x128xf32>
    %260 = arith.negf %259 : vector<2x128xf32>
    %261 = math.exp %260 : vector<2x128xf32>
    %cst_46 = arith.constant 1.000000e+00 : f32
    %262 = vector.broadcast %cst_46 : f32 to vector<2x128xf32>
    %263 = arith.addf %262, %261 : vector<2x128xf32>
    %264 = arith.divf %262, %263 : vector<2x128xf32>
    %265 = math.tanh %259 : vector<2x128xf32>
    %266 = vector.extract_strided_slice %264 {offsets = [0, 0], sizes = [2, 32], strides = [1, 1]} : vector<2x128xf32> to vector<2x32xf32>
    %267 = vector.extract_strided_slice %264 {offsets = [0, 32], sizes = [2, 32], strides = [1, 1]} : vector<2x128xf32> to vector<2x32xf32>
    %268 = vector.extract_strided_slice %265 {offsets = [0, 64], sizes = [2, 32], strides = [1, 1]} : vector<2x128xf32> to vector<2x32xf32>
    %269 = vector.extract_strided_slice %264 {offsets = [0, 96], sizes = [2, 32], strides = [1, 1]} : vector<2x128xf32> to vector<2x32xf32>
    %270 = arith.mulf %267, %220 : vector<2x32xf32>
    %271 = arith.mulf %266, %268 : vector<2x32xf32>
    %272 = arith.addf %270, %271 : vector<2x32xf32>
    %273 = math.tanh %272 : vector<2x32xf32>
    %274 = arith.mulf %269, %273 : vector<2x32xf32>
    %275 = vector.shape_cast %255 : vector<2x1xi1> to vector<2x1xi1>
    %276 = vector.broadcast %275 : vector<2x1xi1> to vector<2x32xi1>
    %277 = arith.select %276, %274, %217 : vector<2x32xi1>, vector<2x32xf32>
    %278 = vector.shape_cast %255 : vector<2x1xi1> to vector<2x1xi1>
    %279 = vector.broadcast %278 : vector<2x1xi1> to vector<2x32xi1>
    %280 = arith.select %279, %272, %220 : vector<2x32xi1>, vector<2x32xf32>
    %281 = arith.index_cast %c4_i32 : i32 to index
    %c0_47 = arith.constant 0 : index
    %c0_48 = arith.constant 0 : index
    %282 = vector.load %arg2[%281, %c0_47, %c0_48] : memref<8x2x32xbf16, #tpu.memory_space<vmem>>, vector<1x2x32xbf16>
    %283 = vector.shape_cast %282 : vector<1x2x32xbf16> to vector<2x32xbf16>
    %284 = vector.broadcast %c4_i32 : i32 to vector<2x1xi32>
    %285 = arith.cmpi sgt, %9, %284 : vector<2x1xi32>
    %286 = arith.truncf %247 : vector<2x32xf32> to vector<2x32xbf16>
    %287 = tpu.concatenate %283, %286 in 1 : vector<2x32xbf16>, vector<2x32xbf16> -> vector<2x64xbf16>
    %cst_49 = arith.constant dense<0.000000e+00> : vector<2x128xf32>
    %288 = tpu.matmul %287, %1, %cst_49 {dimension_numbers = #tpu.dot_dimension_numbers<[1], [0], [0], [1], [0, 0, 1, 1], [], []>} : vector<2x64xbf16>, vector<64x128xbf16>, vector<2x128xf32> -> vector<2x128xf32>
    %289 = arith.addf %288, %7 : vector<2x128xf32>
    %290 = arith.negf %289 : vector<2x128xf32>
    %291 = math.exp %290 : vector<2x128xf32>
    %cst_50 = arith.constant 1.000000e+00 : f32
    %292 = vector.broadcast %cst_50 : f32 to vector<2x128xf32>
    %293 = arith.addf %292, %291 : vector<2x128xf32>
    %294 = arith.divf %292, %293 : vector<2x128xf32>
    %295 = math.tanh %289 : vector<2x128xf32>
    %296 = vector.extract_strided_slice %294 {offsets = [0, 0], sizes = [2, 32], strides = [1, 1]} : vector<2x128xf32> to vector<2x32xf32>
    %297 = vector.extract_strided_slice %294 {offsets = [0, 32], sizes = [2, 32], strides = [1, 1]} : vector<2x128xf32> to vector<2x32xf32>
    %298 = vector.extract_strided_slice %295 {offsets = [0, 64], sizes = [2, 32], strides = [1, 1]} : vector<2x128xf32> to vector<2x32xf32>
    %299 = vector.extract_strided_slice %294 {offsets = [0, 96], sizes = [2, 32], strides = [1, 1]} : vector<2x128xf32> to vector<2x32xf32>
    %300 = arith.mulf %297, %250 : vector<2x32xf32>
    %301 = arith.mulf %296, %298 : vector<2x32xf32>
    %302 = arith.addf %300, %301 : vector<2x32xf32>
    %303 = math.tanh %302 : vector<2x32xf32>
    %304 = arith.mulf %299, %303 : vector<2x32xf32>
    %305 = vector.shape_cast %285 : vector<2x1xi1> to vector<2x1xi1>
    %306 = vector.broadcast %305 : vector<2x1xi1> to vector<2x32xi1>
    %307 = arith.select %306, %304, %247 : vector<2x32xi1>, vector<2x32xf32>
    %308 = vector.shape_cast %285 : vector<2x1xi1> to vector<2x1xi1>
    %309 = vector.broadcast %308 : vector<2x1xi1> to vector<2x32xi1>
    %310 = arith.select %309, %302, %250 : vector<2x32xi1>, vector<2x32xf32>
    %c5_i32 = arith.constant 5 : i32
    %311 = arith.index_cast %c5_i32 : i32 to index
    %c0_51 = arith.constant 0 : index
    %c0_52 = arith.constant 0 : index
    %312 = vector.load %arg1[%311, %c0_51, %c0_52] : memref<8x2x32xbf16, #tpu.memory_space<vmem>>, vector<1x2x32xbf16>
    %313 = vector.shape_cast %312 : vector<1x2x32xbf16> to vector<2x32xbf16>
    %314 = vector.broadcast %c5_i32 : i32 to vector<2x1xi32>
    %315 = arith.cmpi sgt, %8, %314 : vector<2x1xi32>
    %316 = arith.truncf %277 : vector<2x32xf32> to vector<2x32xbf16>
    %317 = tpu.concatenate %313, %316 in 1 : vector<2x32xbf16>, vector<2x32xbf16> -> vector<2x64xbf16>
    %cst_53 = arith.constant dense<0.000000e+00> : vector<2x128xf32>
    %318 = tpu.matmul %317, %0, %cst_53 {dimension_numbers = #tpu.dot_dimension_numbers<[1], [0], [0], [1], [0, 0, 1, 1], [], []>} : vector<2x64xbf16>, vector<64x128xbf16>, vector<2x128xf32> -> vector<2x128xf32>
    %319 = arith.addf %318, %4 : vector<2x128xf32>
    %320 = arith.negf %319 : vector<2x128xf32>
    %321 = math.exp %320 : vector<2x128xf32>
    %cst_54 = arith.constant 1.000000e+00 : f32
    %322 = vector.broadcast %cst_54 : f32 to vector<2x128xf32>
    %323 = arith.addf %322, %321 : vector<2x128xf32>
    %324 = arith.divf %322, %323 : vector<2x128xf32>
    %325 = math.tanh %319 : vector<2x128xf32>
    %326 = vector.extract_strided_slice %324 {offsets = [0, 0], sizes = [2, 32], strides = [1, 1]} : vector<2x128xf32> to vector<2x32xf32>
    %327 = vector.extract_strided_slice %324 {offsets = [0, 32], sizes = [2, 32], strides = [1, 1]} : vector<2x128xf32> to vector<2x32xf32>
    %328 = vector.extract_strided_slice %325 {offsets = [0, 64], sizes = [2, 32], strides = [1, 1]} : vector<2x128xf32> to vector<2x32xf32>
    %329 = vector.extract_strided_slice %324 {offsets = [0, 96], sizes = [2, 32], strides = [1, 1]} : vector<2x128xf32> to vector<2x32xf32>
    %330 = arith.mulf %327, %280 : vector<2x32xf32>
    %331 = arith.mulf %326, %328 : vector<2x32xf32>
    %332 = arith.addf %330, %331 : vector<2x32xf32>
    %333 = math.tanh %332 : vector<2x32xf32>
    %334 = arith.mulf %329, %333 : vector<2x32xf32>
    %335 = vector.shape_cast %315 : vector<2x1xi1> to vector<2x1xi1>
    %336 = vector.broadcast %335 : vector<2x1xi1> to vector<2x32xi1>
    %337 = arith.select %336, %334, %277 : vector<2x32xi1>, vector<2x32xf32>
    %338 = vector.shape_cast %315 : vector<2x1xi1> to vector<2x1xi1>
    %339 = vector.broadcast %338 : vector<2x1xi1> to vector<2x32xi1>
    %340 = arith.select %339, %332, %280 : vector<2x32xi1>, vector<2x32xf32>
    %341 = arith.index_cast %c5_i32 : i32 to index
    %c0_55 = arith.constant 0 : index
    %c0_56 = arith.constant 0 : index
    %342 = vector.load %arg2[%341, %c0_55, %c0_56] : memref<8x2x32xbf16, #tpu.memory_space<vmem>>, vector<1x2x32xbf16>
    %343 = vector.shape_cast %342 : vector<1x2x32xbf16> to vector<2x32xbf16>
    %344 = vector.broadcast %c5_i32 : i32 to vector<2x1xi32>
    %345 = arith.cmpi sgt, %9, %344 : vector<2x1xi32>
    %346 = arith.truncf %307 : vector<2x32xf32> to vector<2x32xbf16>
    %347 = tpu.concatenate %343, %346 in 1 : vector<2x32xbf16>, vector<2x32xbf16> -> vector<2x64xbf16>
    %cst_57 = arith.constant dense<0.000000e+00> : vector<2x128xf32>
    %348 = tpu.matmul %347, %1, %cst_57 {dimension_numbers = #tpu.dot_dimension_numbers<[1], [0], [0], [1], [0, 0, 1, 1], [], []>} : vector<2x64xbf16>, vector<64x128xbf16>, vector<2x128xf32> -> vector<2x128xf32>
    %349 = arith.addf %348, %7 : vector<2x128xf32>
    %350 = arith.negf %349 : vector<2x128xf32>
    %351 = math.exp %350 : vector<2x128xf32>
    %cst_58 = arith.constant 1.000000e+00 : f32
    %352 = vector.broadcast %cst_58 : f32 to vector<2x128xf32>
    %353 = arith.addf %352, %351 : vector<2x128xf32>
    %354 = arith.divf %352, %353 : vector<2x128xf32>
    %355 = math.tanh %349 : vector<2x128xf32>
    %356 = vector.extract_strided_slice %354 {offsets = [0, 0], sizes = [2, 32], strides = [1, 1]} : vector<2x128xf32> to vector<2x32xf32>
    %357 = vector.extract_strided_slice %354 {offsets = [0, 32], sizes = [2, 32], strides = [1, 1]} : vector<2x128xf32> to vector<2x32xf32>
    %358 = vector.extract_strided_slice %355 {offsets = [0, 64], sizes = [2, 32], strides = [1, 1]} : vector<2x128xf32> to vector<2x32xf32>
    %359 = vector.extract_strided_slice %354 {offsets = [0, 96], sizes = [2, 32], strides = [1, 1]} : vector<2x128xf32> to vector<2x32xf32>
    %360 = arith.mulf %357, %310 : vector<2x32xf32>
    %361 = arith.mulf %356, %358 : vector<2x32xf32>
    %362 = arith.addf %360, %361 : vector<2x32xf32>
    %363 = math.tanh %362 : vector<2x32xf32>
    %364 = arith.mulf %359, %363 : vector<2x32xf32>
    %365 = vector.shape_cast %345 : vector<2x1xi1> to vector<2x1xi1>
    %366 = vector.broadcast %365 : vector<2x1xi1> to vector<2x32xi1>
    %367 = arith.select %366, %364, %307 : vector<2x32xi1>, vector<2x32xf32>
    %368 = vector.shape_cast %345 : vector<2x1xi1> to vector<2x1xi1>
    %369 = vector.broadcast %368 : vector<2x1xi1> to vector<2x32xi1>
    %370 = arith.select %369, %362, %310 : vector<2x32xi1>, vector<2x32xf32>
    %c6_i32 = arith.constant 6 : i32
    %371 = arith.index_cast %c6_i32 : i32 to index
    %c0_59 = arith.constant 0 : index
    %c0_60 = arith.constant 0 : index
    %372 = vector.load %arg1[%371, %c0_59, %c0_60] : memref<8x2x32xbf16, #tpu.memory_space<vmem>>, vector<1x2x32xbf16>
    %373 = vector.shape_cast %372 : vector<1x2x32xbf16> to vector<2x32xbf16>
    %374 = vector.broadcast %c6_i32 : i32 to vector<2x1xi32>
    %375 = arith.cmpi sgt, %8, %374 : vector<2x1xi32>
    %376 = arith.truncf %337 : vector<2x32xf32> to vector<2x32xbf16>
    %377 = tpu.concatenate %373, %376 in 1 : vector<2x32xbf16>, vector<2x32xbf16> -> vector<2x64xbf16>
    %cst_61 = arith.constant dense<0.000000e+00> : vector<2x128xf32>
    %378 = tpu.matmul %377, %0, %cst_61 {dimension_numbers = #tpu.dot_dimension_numbers<[1], [0], [0], [1], [0, 0, 1, 1], [], []>} : vector<2x64xbf16>, vector<64x128xbf16>, vector<2x128xf32> -> vector<2x128xf32>
    %379 = arith.addf %378, %4 : vector<2x128xf32>
    %380 = arith.negf %379 : vector<2x128xf32>
    %381 = math.exp %380 : vector<2x128xf32>
    %cst_62 = arith.constant 1.000000e+00 : f32
    %382 = vector.broadcast %cst_62 : f32 to vector<2x128xf32>
    %383 = arith.addf %382, %381 : vector<2x128xf32>
    %384 = arith.divf %382, %383 : vector<2x128xf32>
    %385 = math.tanh %379 : vector<2x128xf32>
    %386 = vector.extract_strided_slice %384 {offsets = [0, 0], sizes = [2, 32], strides = [1, 1]} : vector<2x128xf32> to vector<2x32xf32>
    %387 = vector.extract_strided_slice %384 {offsets = [0, 32], sizes = [2, 32], strides = [1, 1]} : vector<2x128xf32> to vector<2x32xf32>
    %388 = vector.extract_strided_slice %385 {offsets = [0, 64], sizes = [2, 32], strides = [1, 1]} : vector<2x128xf32> to vector<2x32xf32>
    %389 = vector.extract_strided_slice %384 {offsets = [0, 96], sizes = [2, 32], strides = [1, 1]} : vector<2x128xf32> to vector<2x32xf32>
    %390 = arith.mulf %387, %340 : vector<2x32xf32>
    %391 = arith.mulf %386, %388 : vector<2x32xf32>
    %392 = arith.addf %390, %391 : vector<2x32xf32>
    %393 = math.tanh %392 : vector<2x32xf32>
    %394 = arith.mulf %389, %393 : vector<2x32xf32>
    %395 = vector.shape_cast %375 : vector<2x1xi1> to vector<2x1xi1>
    %396 = vector.broadcast %395 : vector<2x1xi1> to vector<2x32xi1>
    %397 = arith.select %396, %394, %337 : vector<2x32xi1>, vector<2x32xf32>
    %398 = vector.shape_cast %375 : vector<2x1xi1> to vector<2x1xi1>
    %399 = vector.broadcast %398 : vector<2x1xi1> to vector<2x32xi1>
    %400 = arith.select %399, %392, %340 : vector<2x32xi1>, vector<2x32xf32>
    %401 = arith.index_cast %c6_i32 : i32 to index
    %c0_63 = arith.constant 0 : index
    %c0_64 = arith.constant 0 : index
    %402 = vector.load %arg2[%401, %c0_63, %c0_64] : memref<8x2x32xbf16, #tpu.memory_space<vmem>>, vector<1x2x32xbf16>
    %403 = vector.shape_cast %402 : vector<1x2x32xbf16> to vector<2x32xbf16>
    %404 = vector.broadcast %c6_i32 : i32 to vector<2x1xi32>
    %405 = arith.cmpi sgt, %9, %404 : vector<2x1xi32>
    %406 = arith.truncf %367 : vector<2x32xf32> to vector<2x32xbf16>
    %407 = tpu.concatenate %403, %406 in 1 : vector<2x32xbf16>, vector<2x32xbf16> -> vector<2x64xbf16>
    %cst_65 = arith.constant dense<0.000000e+00> : vector<2x128xf32>
    %408 = tpu.matmul %407, %1, %cst_65 {dimension_numbers = #tpu.dot_dimension_numbers<[1], [0], [0], [1], [0, 0, 1, 1], [], []>} : vector<2x64xbf16>, vector<64x128xbf16>, vector<2x128xf32> -> vector<2x128xf32>
    %409 = arith.addf %408, %7 : vector<2x128xf32>
    %410 = arith.negf %409 : vector<2x128xf32>
    %411 = math.exp %410 : vector<2x128xf32>
    %cst_66 = arith.constant 1.000000e+00 : f32
    %412 = vector.broadcast %cst_66 : f32 to vector<2x128xf32>
    %413 = arith.addf %412, %411 : vector<2x128xf32>
    %414 = arith.divf %412, %413 : vector<2x128xf32>
    %415 = math.tanh %409 : vector<2x128xf32>
    %416 = vector.extract_strided_slice %414 {offsets = [0, 0], sizes = [2, 32], strides = [1, 1]} : vector<2x128xf32> to vector<2x32xf32>
    %417 = vector.extract_strided_slice %414 {offsets = [0, 32], sizes = [2, 32], strides = [1, 1]} : vector<2x128xf32> to vector<2x32xf32>
    %418 = vector.extract_strided_slice %415 {offsets = [0, 64], sizes = [2, 32], strides = [1, 1]} : vector<2x128xf32> to vector<2x32xf32>
    %419 = vector.extract_strided_slice %414 {offsets = [0, 96], sizes = [2, 32], strides = [1, 1]} : vector<2x128xf32> to vector<2x32xf32>
    %420 = arith.mulf %417, %370 : vector<2x32xf32>
    %421 = arith.mulf %416, %418 : vector<2x32xf32>
    %422 = arith.addf %420, %421 : vector<2x32xf32>
    %423 = math.tanh %422 : vector<2x32xf32>
    %424 = arith.mulf %419, %423 : vector<2x32xf32>
    %425 = vector.shape_cast %405 : vector<2x1xi1> to vector<2x1xi1>
    %426 = vector.broadcast %425 : vector<2x1xi1> to vector<2x32xi1>
    %427 = arith.select %426, %424, %367 : vector<2x32xi1>, vector<2x32xf32>
    %428 = vector.shape_cast %405 : vector<2x1xi1> to vector<2x1xi1>
    %429 = vector.broadcast %428 : vector<2x1xi1> to vector<2x32xi1>
    %430 = arith.select %429, %422, %370 : vector<2x32xi1>, vector<2x32xf32>
    %c7_i32 = arith.constant 7 : i32
    %431 = arith.index_cast %c7_i32 : i32 to index
    %c0_67 = arith.constant 0 : index
    %c0_68 = arith.constant 0 : index
    %432 = vector.load %arg1[%431, %c0_67, %c0_68] : memref<8x2x32xbf16, #tpu.memory_space<vmem>>, vector<1x2x32xbf16>
    %433 = vector.shape_cast %432 : vector<1x2x32xbf16> to vector<2x32xbf16>
    %434 = vector.broadcast %c7_i32 : i32 to vector<2x1xi32>
    %435 = arith.cmpi sgt, %8, %434 : vector<2x1xi32>
    %436 = arith.truncf %397 : vector<2x32xf32> to vector<2x32xbf16>
    %437 = tpu.concatenate %433, %436 in 1 : vector<2x32xbf16>, vector<2x32xbf16> -> vector<2x64xbf16>
    %cst_69 = arith.constant dense<0.000000e+00> : vector<2x128xf32>
    %438 = tpu.matmul %437, %0, %cst_69 {dimension_numbers = #tpu.dot_dimension_numbers<[1], [0], [0], [1], [0, 0, 1, 1], [], []>} : vector<2x64xbf16>, vector<64x128xbf16>, vector<2x128xf32> -> vector<2x128xf32>
    %439 = arith.addf %438, %4 : vector<2x128xf32>
    %440 = arith.negf %439 : vector<2x128xf32>
    %441 = math.exp %440 : vector<2x128xf32>
    %cst_70 = arith.constant 1.000000e+00 : f32
    %442 = vector.broadcast %cst_70 : f32 to vector<2x128xf32>
    %443 = arith.addf %442, %441 : vector<2x128xf32>
    %444 = arith.divf %442, %443 : vector<2x128xf32>
    %445 = math.tanh %439 : vector<2x128xf32>
    %446 = vector.extract_strided_slice %444 {offsets = [0, 0], sizes = [2, 32], strides = [1, 1]} : vector<2x128xf32> to vector<2x32xf32>
    %447 = vector.extract_strided_slice %444 {offsets = [0, 32], sizes = [2, 32], strides = [1, 1]} : vector<2x128xf32> to vector<2x32xf32>
    %448 = vector.extract_strided_slice %445 {offsets = [0, 64], sizes = [2, 32], strides = [1, 1]} : vector<2x128xf32> to vector<2x32xf32>
    %449 = vector.extract_strided_slice %444 {offsets = [0, 96], sizes = [2, 32], strides = [1, 1]} : vector<2x128xf32> to vector<2x32xf32>
    %450 = arith.mulf %447, %400 : vector<2x32xf32>
    %451 = arith.mulf %446, %448 : vector<2x32xf32>
    %452 = arith.addf %450, %451 : vector<2x32xf32>
    %453 = math.tanh %452 : vector<2x32xf32>
    %454 = arith.mulf %449, %453 : vector<2x32xf32>
    %455 = vector.shape_cast %435 : vector<2x1xi1> to vector<2x1xi1>
    %456 = vector.broadcast %455 : vector<2x1xi1> to vector<2x32xi1>
    %457 = arith.select %456, %454, %397 : vector<2x32xi1>, vector<2x32xf32>
    %458 = vector.shape_cast %435 : vector<2x1xi1> to vector<2x1xi1>
    %459 = vector.broadcast %458 : vector<2x1xi1> to vector<2x32xi1>
    %460 = arith.select %459, %452, %400 : vector<2x32xi1>, vector<2x32xf32>
    %461 = arith.index_cast %c7_i32 : i32 to index
    %c0_71 = arith.constant 0 : index
    %c0_72 = arith.constant 0 : index
    %462 = vector.load %arg2[%461, %c0_71, %c0_72] : memref<8x2x32xbf16, #tpu.memory_space<vmem>>, vector<1x2x32xbf16>
    %463 = vector.shape_cast %462 : vector<1x2x32xbf16> to vector<2x32xbf16>
    %464 = vector.broadcast %c7_i32 : i32 to vector<2x1xi32>
    %465 = arith.cmpi sgt, %9, %464 : vector<2x1xi32>
    %466 = arith.truncf %427 : vector<2x32xf32> to vector<2x32xbf16>
    %467 = tpu.concatenate %463, %466 in 1 : vector<2x32xbf16>, vector<2x32xbf16> -> vector<2x64xbf16>
    %cst_73 = arith.constant dense<0.000000e+00> : vector<2x128xf32>
    %468 = tpu.matmul %467, %1, %cst_73 {dimension_numbers = #tpu.dot_dimension_numbers<[1], [0], [0], [1], [0, 0, 1, 1], [], []>} : vector<2x64xbf16>, vector<64x128xbf16>, vector<2x128xf32> -> vector<2x128xf32>
    %469 = arith.addf %468, %7 : vector<2x128xf32>
    %470 = arith.negf %469 : vector<2x128xf32>
    %471 = math.exp %470 : vector<2x128xf32>
    %cst_74 = arith.constant 1.000000e+00 : f32
    %472 = vector.broadcast %cst_74 : f32 to vector<2x128xf32>
    %473 = arith.addf %472, %471 : vector<2x128xf32>
    %474 = arith.divf %472, %473 : vector<2x128xf32>
    %475 = math.tanh %469 : vector<2x128xf32>
    %476 = vector.extract_strided_slice %474 {offsets = [0, 0], sizes = [2, 32], strides = [1, 1]} : vector<2x128xf32> to vector<2x32xf32>
    %477 = vector.extract_strided_slice %474 {offsets = [0, 32], sizes = [2, 32], strides = [1, 1]} : vector<2x128xf32> to vector<2x32xf32>
    %478 = vector.extract_strided_slice %475 {offsets = [0, 64], sizes = [2, 32], strides = [1, 1]} : vector<2x128xf32> to vector<2x32xf32>
    %479 = vector.extract_strided_slice %474 {offsets = [0, 96], sizes = [2, 32], strides = [1, 1]} : vector<2x128xf32> to vector<2x32xf32>
    %480 = arith.mulf %477, %430 : vector<2x32xf32>
    %481 = arith.mulf %476, %478 : vector<2x32xf32>
    %482 = arith.addf %480, %481 : vector<2x32xf32>
    %483 = math.tanh %482 : vector<2x32xf32>
    %484 = arith.mulf %479, %483 : vector<2x32xf32>
    %485 = vector.shape_cast %465 : vector<2x1xi1> to vector<2x1xi1>
    %486 = vector.broadcast %485 : vector<2x1xi1> to vector<2x32xi1>
    %487 = arith.select %486, %484, %427 : vector<2x32xi1>, vector<2x32xf32>
    %488 = vector.shape_cast %465 : vector<2x1xi1> to vector<2x1xi1>
    %489 = vector.broadcast %488 : vector<2x1xi1> to vector<2x32xi1>
    %490 = arith.select %489, %482, %430 : vector<2x32xi1>, vector<2x32xf32>
    %c8_i32 = arith.constant 8 : i32
    %491 = tpu.concatenate %457, %487 in 1 : vector<2x32xf32>, vector<2x32xf32> -> vector<2x64xf32>
    %492 = arith.truncf %491 : vector<2x64xf32> to vector<2x64xbf16>
    %c0_75 = arith.constant 0 : index
    %c0_76 = arith.constant 0 : index
    %493 = vector.load %arg9[%c0_75, %c0_76] : memref<64x128xbf16, #tpu.memory_space<vmem>>, vector<64x128xbf16>
    %cst_77 = arith.constant dense<0.000000e+00> : vector<2x128xf32>
    %494 = tpu.matmul %492, %493, %cst_77 {dimension_numbers = #tpu.dot_dimension_numbers<[1], [0], [0], [1], [0, 0, 1, 1], [], []>} : vector<2x64xbf16>, vector<64x128xbf16>, vector<2x128xf32> -> vector<2x128xf32>
    %c0_78 = arith.constant 0 : index
    %c0_79 = arith.constant 0 : index
    %495 = vector.load %arg10[%c0_78, %c0_79] : memref<1x128xf32, #tpu.memory_space<vmem>>, vector<1x128xf32>
    %496 = vector.broadcast %495 : vector<1x128xf32> to vector<2x128xf32>
    %497 = arith.addf %494, %496 : vector<2x128xf32>
    %c0_80 = arith.constant 0 : index
    %c0_81 = arith.constant 0 : index
    %498 = vector.load %arg11[%c0_80, %c0_81] : memref<2x128xf32, #tpu.memory_space<vmem>>, vector<2x128xf32>
    tpu.vector_store %arg11[%c0_80, %c0_81], %497 {strides = array<i32>} : memref<2x128xf32, #tpu.memory_space<vmem>>, vector<2x128xf32>,
    return
  }
  func.func @transform_0(%arg0: i32) -> (i32, i32, i32) {
    %c0_i32 = arith.constant 0 : i32
    %c0_i32_0 = arith.constant 0 : i32
    %c0_i32_1 = arith.constant 0 : i32
    return %c0_i32, %arg0, %c0_i32_0 : i32, i32, i32
  }
  func.func @transform_1(%arg0: i32) -> (i32, i32, i32) {
    %c0_i32 = arith.constant 0 : i32
    %c0_i32_0 = arith.constant 0 : i32
    %c0_i32_1 = arith.constant 0 : i32
    return %c0_i32, %arg0, %c0_i32_0 : i32, i32, i32
  }
  func.func @transform_2(%arg0: i32) -> (i32, i32) {
    %c0_i32 = arith.constant 0 : i32
    %c0_i32_0 = arith.constant 0 : i32
    return %arg0, %c0_i32 : i32, i32
  }
  func.func @transform_3(%arg0: i32) -> (i32, i32) {
    %c0_i32 = arith.constant 0 : i32
    %c0_i32_0 = arith.constant 0 : i32
    return %arg0, %c0_i32 : i32, i32
  }
  func.func @transform_4(%arg0: i32) -> (i32, i32) {
    %c0_i32 = arith.constant 0 : i32
    %c0_i32_0 = arith.constant 0 : i32
    %c0_i32_1 = arith.constant 0 : i32
    return %c0_i32, %c0_i32_0 : i32, i32
  }
  func.func @transform_5(%arg0: i32) -> (i32, i32) {
    %c0_i32 = arith.constant 0 : i32
    %c0_i32_0 = arith.constant 0 : i32
    %c0_i32_1 = arith.constant 0 : i32
    return %c0_i32, %c0_i32_0 : i32, i32
  }
  func.func @transform_6(%arg0: i32) -> (i32, i32) {
    %c0_i32 = arith.constant 0 : i32
    %c0_i32_0 = arith.constant 0 : i32
    %c0_i32_1 = arith.constant 0 : i32
    return %c0_i32, %c0_i32_0 : i32, i32
  }
  func.func @transform_7(%arg0: i32) -> (i32, i32) {
    %c0_i32 = arith.constant 0 : i32
    %c0_i32_0 = arith.constant 0 : i32
    %c0_i32_1 = arith.constant 0 : i32
    return %c0_i32, %c0_i32_0 : i32, i32
  }
  func.func @transform_8(%arg0: i32) -> (i32, i32) {
    %c0_i32 = arith.constant 0 : i32
    %c0_i32_0 = arith.constant 0 : i32
    %c0_i32_1 = arith.constant 0 : i32
    return %c0_i32, %c0_i32_0 : i32, i32
  }
  func.func @transform_9(%arg0: i32) -> (i32, i32) {
    %c0_i32 = arith.constant 0 : i32
    %c0_i32_0 = arith.constant 0 : i32
    %c0_i32_1 = arith.constant 0 : i32
    return %c0_i32, %c0_i32_0 : i32, i32
  }
  func.func @transform_10(%arg0: i32) -> (i32, i32) {
    %c0_i32 = arith.constant 0 : i32
    %c0_i32_0 = arith.constant 0 : i32
    return %arg0, %c0_i32 : i32, i32
  }
}

</mosaic_0001>

<bundles_post_ra>
// kernel: tpu_custom_call.1
= control target key start
LH: loop header
LB: loop body
LE: loop exit
PB: predicated region body
PF: predicated region fallthrough
CT: control target
= control target key end

     0   :  { %15 = vsyncpa [#allocation3], 0  ;;  %s2422_s0 = inlined_call_operand.hbm [shape: bf16[8,2,32], index: 0, kind: input, shape index: {}]   ;;  %s2423_s1 = inlined_call_operand.hbm [shape: bf16[8,2,32], index: 1, kind: input, shape index: {}]   ;;  %s2424_s2 = inlined_call_operand.vmem [shape: s32[2,1], index: 2, kind: input, shape index: {}]   ;;  %s2425_s3 = inlined_call_operand.vmem [shape: s32[2,1], index: 3, kind: input, shape index: {}]   ;;  %s2426_s4 = inlined_call_operand.hbm [shape: bf16[64,128], index: 4, kind: input, shape index: {}]   ;;  %s2427_s5 = inlined_call_operand.vmem [shape: f32[1,128], index: 5, kind: input, shape index: {}]   ;;  %s2428_s6 = inlined_call_operand.hbm [shape: bf16[64,128], index: 6, kind: input, shape index: {}]   ;;  %s2429_s7 = inlined_call_operand.vmem [shape: f32[1,128], index: 7, kind: input, shape index: {}]   ;;  %s2430_s8 = inlined_call_operand.hbm [shape: bf16[64,128], index: 8, kind: input, shape index: {}]   ;;  %s2431_s9 = inlined_call_operand.vmem [shape: f32[1,128], index: 9, kind: input, shape index: {}]   ;;  %s2432_s10 = inlined_call_operand.hbm [shape: f32[2,128], index: 10, kind: output, shape index: {}]  }
   0x1   :  { %16 = vsyncpa [#allocation6], 0 }
   0x2   :  { %17 = vsyncpa [#allocation9], 0 }
   0x3   :  { %18 = vsyncpa [#allocation4], 0  ;;  %s36_s15 = sshll.u32 %s2423_s1, 4  ;;  %s1787_s16 = smov [#allocation5]   ;;  %s37_s15 = int_to_ptr.hbm [resolvable:$true] %s36_s15 }
   0x4   :  { %s38_s17 = sshll.u32 %s1787_s16, 4  ;;  %s1788_s18 = smov 16   ;;  %s39_s17 = int_to_ptr.vmem [resolvable:$true] %s38_s17 }
   0x5   :  { %s1789_s19 = smov 1   ;;  %s68_s22 = sshll.u32 %s2428_s6, 4  ;;  %s69_s22 = int_to_ptr.hbm [resolvable:$true] %s68_s22 }
   0x6   :  { %44 = dma.hbm_to_vmem [thread:$0]  %s37_s15, 128, %s39_s17, [#allocation6], %s1788_s18, %s1788_s18, %s1789_s19  }
   0x7   :  { %s1790_s23 = smov [#allocation8]   ;;  %s23_s27 = sshll.u32 %s2422_s0, 4  ;;  %s24_s27 = int_to_ptr.hbm [resolvable:$true] %s23_s27 }
   0x8   :  { %s70_s24 = sshll.u32 %s1790_s23, 4  ;;  %s1791_s1 = smov 64   ;;  %s71_s24 = int_to_ptr.vmem [resolvable:$true] %s70_s24 }
   0x9   :  { %s1792_s28 = smov 4   ;;  %s53_s11 = sshll.u32 %s2426_s4, 4  ;;  %s54_s11 = int_to_ptr.hbm [resolvable:$true] %s53_s11 }
   0xa   :  { %76 = dma.hbm_to_vmem [thread:$0]  %s69_s22, 512, %s71_s24, [#allocation9], %s1791_s1, %s1791_s1, %s1792_s28  }
   0xb   :  { %s1793_s12 = smov [#allocation2]   ;;  %s1794_s13 = smov [#allocation7]  }
   0xc   :  { %s25_s6 = sshll.u32 %s1793_s12, 4  ;;  %s55_s14 = sshll.u32 %s1794_s13, 4  ;;  %s26_s6 = int_to_ptr.vmem [resolvable:$true] %s25_s6  ;;  %s56_s14 = int_to_ptr.vmem [resolvable:$true] %s55_s14 }
   0xd   :  { %31 = dma.hbm_to_vmem [thread:$0]  %s24_s27, 128, %s26_s6, [#allocation3], %s1788_s18, %s1788_s18, %s1789_s19  }
   0xe   :  { %s83_s16 = sshll.u32 %s2430_s8, 4  ;;  %s1795_s17 = smov [#allocation10]   ;;  %s84_s16 = int_to_ptr.hbm [resolvable:$true] %s83_s16 }
   0xf   :  { %61 = dma.hbm_to_vmem [thread:$0]  %s54_s11, 512, %s56_s14, [#allocation6], %s1791_s1, %s1791_s1, %s1792_s28  }
  0x10   :  { %s85_s20 = sshll.u32 %s1795_s17, 4  ;;  %s86_s20 = int_to_ptr.vmem [resolvable:$true] %s85_s20 }
  0x11   :  { %91 = dma.hbm_to_vmem [thread:$0]  %s84_s16, 512, %s86_s20, [#allocation9], %s1791_s1, %s1791_s1, %s1792_s28  }
  0x12   :  { %1779 = dma.done.wait [#allocation3], 128  }
  0x13   :  { %1780 = vsyncadd [#allocation3], 4294967168 }
  0x14   :  { %1781 = dma.done.wait [#allocation6], 640  }
  0x15   :  { %1782 = vsyncadd [#allocation6], 4294966656 }
  0x16   :  { %1783 = dma.done.wait [#allocation9], 1024  }
  0x17   :  { %1784 = vsyncadd [#allocation9], 4294966272  ;;  %v1875_v0 = vld [vmem:[#allocation7 + $0x18] sm:$0xff]  ;;  %v1881_v2 = vld [vmem:[#allocation7 + $0x10] sm:$0xff]  ;;  %vm143_vm0 = vcmask 261120   ;;  %vm171_vm1 = vcmask 523264  }
  0x18   :  { %v1877_v1 = vld [vmem:[#allocation8 + $0x18] sm:$0xff]  ;;  %178 = vmatpush.bf16.msra.mxu0 %v1875_v0  ;;  %v1883_v3 = vld [vmem:[#allocation8 + $0x10] sm:$0xff]  ;;  %336 = vmatpush.bf16.msra.mxu2 %v1875_v0  ;;  %v1889_v4 = vld [vmem:[#allocation7 + $0x8] sm:$0xff]  ;;  %v1796_v27 = vmov 0   ;;  %s1797_s23 = smov 32   ;;  %s1798_s12 = smov [#allocation11]  }
  0x19   :  { %265 = vmatpush.bf16.msra.mxu1 %v1877_v1  ;;  %407 = vmatpush.bf16.msra.mxu3 %v1877_v1  ;;  %v1891_v5 = vld [vmem:[#allocation8 + $0x8] sm:$0xff]  ;;  %v1897_v6 = vld [vmem:[#allocation7] sm:$0xff]  ;;  %v141_v8 = vld [vmem:[#allocation2] sm:$0x1]  ;;  %s1378_s6 = sshll.u32 %s1798_s12, 4  ;;  %s1379_s6 = int_to_ptr.vmem [resolvable:$true] %s1378_s6 }
  0x1a   :  { %v1899_v7 = vld [vmem:[#allocation8] sm:$0xff]  ;;  %v231_v9 = vld [vmem:[#allocation5] sm:$0x1]  ;;  %v146_v10 = vsel %vm143_vm0, %v141_v8, 0  ;;  %v1938_v12 = vld [vmem:[%s2427_s5] ss:$0 sm:$0xff]  ;;  %1497 = vset.pattern.permute.xlu0 %v1796_v27  ;;  %1498 = vset.pattern.permute.xlu1 %v1796_v27 }
  0x1b   :  { %v234_v11 = vsel %vm143_vm0, %v231_v9, 0  ;;  %v1944_v16 = vld [vmem:[%s2429_s7] ss:$0 sm:$0xff]  ;;  %1499 = vset.pattern.permute.xlu2 %v1796_v27 }
  0x1c   :  { %179 = vmatpush.bf16.msra.mxu0 %v1881_v2  ;;  %337 = vmatpush.bf16.msra.mxu2 %v1881_v2  ;;  %v1952_v26 = vld [vmem:[%s2424_s2] sm:$0x3] }
  0x1d   :  { %266 = vmatpush.bf16.msra.mxu1 %v1883_v3  ;;  %408 = vmatpush.bf16.msra.mxu3 %v1883_v3  ;;  %vm142_vm2 = vcmp.gt.s32.totalorder %v1952_v26, 0  ;;  %v1963_v55 = vld [vmem:[%s2425_s3] sm:$0x3] }
  0x1e   :  { %v224_v28 = vsel %vm142_vm2, 1, %v1796_v27  ;;  %vm232_vm11 = vcmp.gt.s32.totalorder %v1963_v55, 0 }
  0x1f   :  { %v311_v56 = vsel %vm232_vm11, 1, %v1796_v27 }
  0x20   :  { %180 = vmatpush.bf16.msra.mxu0 %v1889_v4  ;;  %338 = vmatpush.bf16.msra.mxu2 %v1889_v4 }
  0x21   :  { %267 = vmatpush.bf16.msra.mxu1 %v1891_v5  ;;  %409 = vmatpush.bf16.msra.mxu3 %v1891_v5 }
  0x24   :  { %181 = vmatpush.bf16.msra.mxu0 %v1897_v6  ;;  %339 = vmatpush.bf16.msra.mxu2 %v1897_v6 }
  0x25   :  { %268 = vmatpush.bf16.msra.mxu1 %v1899_v7  ;;  %410 = vmatpush.bf16.msra.mxu3 %v1899_v7 }
  0x27   :  { %1408 = vmatmul.msk.bf16.vlgmr.msra.gmra.mxu0 %vm171_vm1, %v146_v10 }
  0x28   :  { %478 = vmatpush.bf16.msrb.mxu0 %v1875_v0  ;;  %1426 = vmatmul.msk.bf16.vlgmr.msra.gmra.mxu1 %vm171_vm1, %v234_v11 }
  0x29   :  { %549 = vmatpush.bf16.msrb.mxu1 %v1877_v1  ;;  %620 = vmatpush.bf16.msrb.mxu2 %v1875_v0 }
  0x2a   :  { %691 = vmatpush.bf16.msrb.mxu3 %v1877_v1 }
  0x2c   :  { %479 = vmatpush.bf16.msrb.mxu0 %v1881_v2 }
  0x2d   :  { %550 = vmatpush.bf16.msrb.mxu1 %v1883_v3  ;;  %621 = vmatpush.bf16.msrb.mxu2 %v1881_v2 }
  0x2e   :  { %692 = vmatpush.bf16.msrb.mxu3 %v1883_v3 }
  0x30   :  { %480 = vmatpush.bf16.msrb.mxu0 %v1889_v4 }
  0x31   :  { %551 = vmatpush.bf16.msrb.mxu1 %v1891_v5  ;;  %622 = vmatpush.bf16.msrb.mxu2 %v1889_v4 }
  0x32   :  { %693 = vmatpush.bf16.msrb.mxu3 %v1891_v5 }
  0x34   :  { %481 = vmatpush.bf16.msrb.mxu0 %v1897_v6 }
  0x35   :  { %552 = vmatpush.bf16.msrb.mxu1 %v1899_v7  ;;  %623 = vmatpush.bf16.msrb.mxu2 %v1897_v6 }
  0x36   :  { %694 = vmatpush.bf16.msrb.mxu3 %v1899_v7 }
  0x38   :  { %762 = vmatpush.bf16.msra.mxu0 %v1875_v0 }
  0x39   :  { %833 = vmatpush.bf16.msra.mxu1 %v1877_v1 }
  0x3c   :  { %763 = vmatpush.bf16.msra.mxu0 %v1881_v2 }
  0x3d   :  { %834 = vmatpush.bf16.msra.mxu1 %v1883_v3 }
  0x40   :  { %764 = vmatpush.bf16.msra.mxu0 %v1889_v4 }
  0x41   :  { %835 = vmatpush.bf16.msra.mxu1 %v1891_v5 }
  0x44   :  { %765 = vmatpush.bf16.msra.mxu0 %v1897_v6 }
  0x45   :  { %836 = vmatpush.bf16.msra.mxu1 %v1899_v7 }
  0xa4   :  { %v183_v13 = vpop.f32.mrf.mxu0 }
  0xa5   :  { %v270_v14 = vpop.f32.mrf.mxu1  ;;  %v184_v15 = vadd.f32 %v1938_v12, %v183_v13 }
  0xa6   :  { %v271_v17 = vadd.f32 %v1944_v16, %v270_v14 }
  0xa7   :  { %1503 = vtanh.f32 %v184_v15  ;;  %v1409_v22 = vmul.f32 -1.442695, %v184_v15 }
  0xa8   :  { %1505 = vtanh.f32 %v271_v17  ;;  %v1427_v23 = vmul.f32 -1.442695, %v271_v17 }
  0xa9   :  { %1507 = vpow2.f32 %v1409_v22 }
  0xaa   :  { %1509 = vpow2.f32 %v1427_v23 }
  0xac   :  { %v185_v18 = vpop.f32.mrf.mxu0 }
  0xad   :  { %v272_v19 = vpop.f32.mrf.mxu1  ;;  %v1504_v20 = vpop.eup %1503 }
  0xae   :  { %209 = vrot.lane.b32.xlu0 %v1504_v20, %s1791_s1  ;;  %v1506_v21 = vpop.eup %1505 }
  0xaf   :  { %v1508_v24 = vpop.eup %1507 }
  0xb0   :  { %v190_v25 = vadd.f32 1.0, %v1508_v24  ;;  %v1510_v29 = vpop.eup %1509 }
  0xb1   :  { %v277_v30 = vadd.f32 1.0, %v1510_v29 }
  0xb2   :  { %1511 = vrcp.f32 %v190_v25  ;;  %v202_v39 = vand.u32 2147483648, %v190_v25  ;;  %vm196_vm4 = vweird.f32 %v190_v25  ;;  %v200_v40 = vand.u32 2147483647, %v190_v25 }
  0xb3   :  { %1513 = vrcp.f32 %v277_v30  ;;  %vm283_vm7 = vweird.f32 %v277_v30  ;;  %v289_v48 = vand.u32 2147483648, %v277_v30  ;;  %v287_v49 = vand.u32 2147483647, %v277_v30 }
  0xb4   :  { %v203_v43 = vor.u32 1.1754944e-38, %v202_v39  ;;  %vm201_vm6 = vcmp.eq.f32.partialorder %v200_v40, 8.507059e+37 }
  0xb5   :  { %v290_v51 = vor.u32 1.1754944e-38, %v289_v48  ;;  %vm288_vm10 = vcmp.eq.f32.partialorder %v287_v49, 8.507059e+37 }
  0xb6   :  { %296 = vrot.lane.b32.xlu0 %v1506_v21, %s1791_s1 }
  0xb8   :  { %v1512_v31 = vpop.eup %1511 }
  0xb9   :  { %v192_v32 = vmul.f32 %v1512_v31, %v190_v25  ;;  %v1514_v34 = vpop.eup %1513  ;;  %vm197_vm3 = vweird.f32 %v1512_v31  ;;  %v319_v25 = vld [vmem:[#allocation2 + $0x1] sm:$0x1] }
  0xba   :  { %v279_v36 = vmul.f32 %v1514_v34, %v277_v30  ;;  %vm198_vm5 = vmor %vm196_vm4, %vm197_vm3  ;;  %vm284_vm8 = vweird.f32 %v1514_v34  ;;  %v390_v30 = vld [vmem:[#allocation5 + $0x1] sm:$0x1] }
  0xbb   :  { %v193_v33 = vsub.f32 1.0, %v192_v32  ;;  %vm285_vm9 = vmor %vm283_vm7, %vm284_vm8  ;;  %vm320_vm8 = vcmp.gt.s32.totalorder %v1952_v26, 1 }
  0xbc   :  { %v280_v38 = vsub.f32 1.0, %v279_v36 }
  0xbd   :  { %v194_v35 = vmul.f32 %v1512_v31, %v193_v33 }
  0xbe   :  { %226 = vperm.xlu0 %1497, %v224_v28   ;;  %v281_v42 = vmul.f32 %v1514_v34, %v280_v38 }
  0xbf   :  { %v195_v37 = vadd.f32 %v1512_v31, %v194_v35 }
  0xc0   :  { %v282_v47 = vadd.f32 %v1514_v34, %v281_v42 }
  0xc1   :  { %v199_v41 = vsel %vm198_vm5, %v1512_v31, %v195_v37 }
  0xc2   :  { %v204_v45 = vsel %vm201_vm6, %v203_v43, %v199_v41  ;;  %v286_v50 = vsel %vm285_vm9, %v1514_v34, %v282_v47  ;;  %vm391_vm9 = vcmp.gt.s32.totalorder %v1963_v55, 1 }
  0xc3   :  { %v291_v52 = vsel %vm288_vm10, %v290_v51, %v286_v50  ;;  %v207_v57 = vmul.f32 0.0, %v204_v45 }
  0xc4   :  { %v294_v60 = vmul.f32 0.0, %v291_v52 }
 0x120   :  { %v210_v44 = vpop.permute.xlu0 %209 }
 0x121   :  { %v212_v46 = vmul.f32 %v210_v44, %v204_v45 }
 0x123   :  { %214 = vrot.lane.b32.xlu1 %v212_v46, %s1797_s23 }
 0x128   :  { %v297_v53 = vpop.permute.xlu0 %296 }
 0x129   :  { %v299_v54 = vmul.f32 %v297_v53, %v291_v52 }
 0x12b   :  { %301 = vrot.lane.b32.xlu1 %v299_v54, %s1797_s23 }
 0x130   :  { %v1976_v9 = vpop.permute.xlu0 %226 }
 0x131   :  { %vm228_vm12 = vcmp.eq.s32.totalorder %v1976_v9, 1 }
 0x133   :  { %313 = vperm.xlu1 %1498, %v311_v56  }
 0x195   :  { %v215_v58 = vpop.permute.xlu1 %214 }
 0x196   :  { %v1968_v59 = vadd.f32 %v215_v58, %v207_v57 }
 0x198   :  { %1515 = vtanh.f32 %v1968_v59 }
 0x19d   :  { %v302_v61 = vpop.permute.xlu1 %301 }
 0x19e   :  { %v1516_v62 = vpop.eup %1515  ;;  %v1971_v63 = vadd.f32 %v302_v61, %v294_v60 }
 0x19f   :  { %220 = vrot.lane.b32.xlu2 %v1516_v62, %s1791_s1 }
 0x1a0   :  { %1517 = vtanh.f32 %v1971_v63 }
 0x1a5   :  { %v1985_v17 = vpop.permute.xlu1 %313 }
 0x1a6   :  { %v1518_v8 = vpop.eup %1517  ;;  %vm315_vm13 = vcmp.eq.s32.totalorder %v1985_v17, 1 }
 0x1a7   :  { %307 = vrot.lane.b32.xlu2 %v1518_v8, %s1791_s1 }
 0x1f9   :  { %v221_v10 = vpop.permute.xlu2 %220 }
 0x1fa   :  { %v223_v11 = vmul.f32 %v221_v10, %v204_v45 }
 0x1fc   :  { %v1981_v13 = vsel %vm228_vm12, %v223_v11, 0.0 }
 0x1fd   :  { %v321_v14 = vpack.c.bf16 %v1981_v13, %v1981_v13 }
 0x1ff   :  { %v323_v15 = vunpack.c.l.b16 %v321_v14 }
 0x201   :  { %v308_v18 = vpop.permute.xlu2 %307  ;;  %v324_v19 = vpack.c.b16 %v323_v15, %v323_v15 }
 0x202   :  { %v310_v20 = vmul.f32 %v308_v18, %v291_v52 }
 0x203   :  { %325 = vrot.lane.b32.xlu2 %v324_v19, %s1791_s1 }
 0x204   :  { %v1991_v21 = vsel %vm315_vm13, %v310_v20, 0.0 }
 0x205   :  { %v392_v22 = vpack.c.bf16 %v1991_v21, %v1991_v21 }
 0x207   :  { %v394_v23 = vunpack.c.l.b16 %v392_v22 }
 0x209   :  { %v395_v24 = vpack.c.b16 %v394_v23, %v394_v23 }
 0x20b   :  { %396 = vrot.lane.b32.xlu1 %v395_v24, %s1791_s1  ;;  %v382_v24 = vsel %vm320_vm8, 1, %v1796_v27 }
 0x25d   :  { %v326_v28 = vpop.permute.xlu2 %325 }
 0x25e   :  { %v329_v29 = vsel %vm143_vm0, %v319_v25, %v326_v28  ;;  %v2019_v25 = vsel %vm228_vm12, %v1968_v59, 0.0  ;;  %v2031_v59 = vsel %vm315_vm13, %v1971_v63, 0.0 }
 0x25f   :  { %1428 = vmatmul.msk.bf16.vlgmr.msra.gmra.mxu2 %vm171_vm1, %v329_v29 }
 0x260   :  { %904 = vmatpush.bf16.msra.mxu2 %v1875_v0 }
 0x264   :  { %905 = vmatpush.bf16.msra.mxu2 %v1881_v2 }
 0x268   :  { %906 = vmatpush.bf16.msra.mxu2 %v1889_v4 }
 0x26c   :  { %907 = vmatpush.bf16.msra.mxu2 %v1897_v6 }
 0x27d   :  { %v397_v31 = vpop.permute.xlu1 %396 }
 0x27e   :  { %v400_v32 = vsel %vm143_vm0, %v390_v30, %v397_v31 }
 0x27f   :  { %1430 = vmatmul.msk.bf16.vlgmr.msra.gmra.mxu3 %vm171_vm1, %v400_v32  ;;  %v453_v32 = vsel %vm391_vm9, 1, %v1796_v27 }
 0x280   :  { %975 = vmatpush.bf16.msra.mxu3 %v1877_v1 }
 0x284   :  { %976 = vmatpush.bf16.msra.mxu3 %v1883_v3 }
 0x288   :  { %977 = vmatpush.bf16.msra.mxu3 %v1891_v5 }
 0x28c   :  { %978 = vmatpush.bf16.msra.mxu3 %v1899_v7 }
 0x2e2   :  { %v341_v33 = vpop.f32.mrf.mxu2 }
 0x2e3   :  { %v342_v34 = vadd.f32 %v1938_v12, %v341_v33 }
 0x2e5   :  { %1519 = vtanh.f32 %v342_v34  ;;  %v1429_v41 = vmul.f32 -1.442695, %v342_v34 }
 0x2ea   :  { %v343_v35 = vpop.f32.mrf.mxu2 }
 0x2eb   :  { %v1520_v36 = vpop.eup %1519 }
 0x2ec   :  { %367 = vrot.lane.b32.xlu2 %v1520_v36, %s1791_s1 }
 0x302   :  { %v412_v37 = vpop.f32.mrf.mxu3 }
 0x303   :  { %v413_v38 = vadd.f32 %v1944_v16, %v412_v37 }
 0x305   :  { %1521 = vtanh.f32 %v413_v38  ;;  %v1431_v57 = vmul.f32 -1.442695, %v413_v38 }
 0x306   :  { %1523 = vpow2.f32 %v1429_v41 }
 0x30a   :  { %v414_v39 = vpop.f32.mrf.mxu3 }
 0x30b   :  { %v1522_v40 = vpop.eup %1521 }
 0x30c   :  { %438 = vrot.lane.b32.xlu0 %v1522_v40, %s1791_s1  ;;  %v1524_v42 = vpop.eup %1523 }
 0x30d   :  { %v348_v43 = vadd.f32 1.0, %v1524_v42 }
 0x30f   :  { %1525 = vrcp.f32 %v348_v43  ;;  %v360_v49 = vand.u32 2147483648, %v348_v43  ;;  %vm354_vm15 = vweird.f32 %v348_v43  ;;  %v358_v50 = vand.u32 2147483647, %v348_v43 }
 0x310   :  { %1527 = vpow2.f32 %v1431_v57 }
 0x311   :  { %v361_v52 = vor.u32 1.1754944e-38, %v360_v49  ;;  %vm359_vm3 = vcmp.eq.f32.partialorder %v358_v50, 8.507059e+37  ;;  %v532_v50 = vld [vmem:[#allocation5 + $0x2] sm:$0x1] }
 0x315   :  { %v1526_v44 = vpop.eup %1525 }
 0x316   :  { %v350_v45 = vmul.f32 %v1526_v44, %v348_v43  ;;  %vm355_vm14 = vweird.f32 %v1526_v44  ;;  %v1528_v58 = vpop.eup %1527 }
 0x317   :  { %vm356_vm2 = vmor %vm354_vm15, %vm355_vm14  ;;  %v419_v60 = vadd.f32 1.0, %v1528_v58 }
 0x318   :  { %v351_v46 = vsub.f32 1.0, %v350_v45 }
 0x319   :  { %1529 = vrcp.f32 %v419_v60  ;;  %v431_v14 = vand.u32 2147483648, %v419_v60  ;;  %vm425_vm5 = vweird.f32 %v419_v60  ;;  %v429_v15 = vand.u32 2147483647, %v419_v60 }
 0x31a   :  { %v352_v47 = vmul.f32 %v1526_v44, %v351_v46 }
 0x31b   :  { %v432_v19 = vor.u32 1.1754944e-38, %v431_v14  ;;  %vm430_vm7 = vcmp.eq.f32.partialorder %v429_v15, 8.507059e+37 }
 0x31c   :  { %v353_v48 = vadd.f32 %v1526_v44, %v352_v47  ;;  %v461_v47 = vld [vmem:[#allocation2 + $0x2] sm:$0x1] }
 0x31e   :  { %v357_v51 = vsel %vm356_vm2, %v1526_v44, %v353_v48 }
 0x31f   :  { %v362_v54 = vsel %vm359_vm3, %v361_v52, %v357_v51  ;;  %v1530_v61 = vpop.eup %1529 }
 0x320   :  { %v421_v62 = vmul.f32 %v1530_v61, %v419_v60  ;;  %vm426_vm4 = vweird.f32 %v1530_v61  ;;  %v365_v28 = vmul.f32 %v362_v54, %v2019_v25 }
 0x321   :  { %vm427_vm6 = vmor %vm425_vm5, %vm426_vm4 }
 0x322   :  { %v422_v8 = vsub.f32 1.0, %v421_v62 }
 0x324   :  { %v423_v10 = vmul.f32 %v1530_v61, %v422_v8 }
 0x326   :  { %v424_v11 = vadd.f32 %v1530_v61, %v423_v10 }
 0x328   :  { %v428_v18 = vsel %vm427_vm6, %v1530_v61, %v424_v11  ;;  %vm462_vm6 = vcmp.gt.s32.totalorder %v1952_v26, 2 }
 0x329   :  { %v433_v22 = vsel %vm430_vm7, %v432_v19, %v428_v18  ;;  %vm533_vm7 = vcmp.gt.s32.totalorder %v1963_v55, 2 }
 0x32a   :  { %v436_v9 = vmul.f32 %v433_v22, %v2031_v59 }
 0x346   :  { %v368_v53 = vpop.permute.xlu2 %367 }
 0x347   :  { %v370_v56 = vmul.f32 %v368_v53, %v362_v54 }
 0x349   :  { %372 = vrot.lane.b32.xlu1 %v370_v56, %s1797_s23 }
 0x37e   :  { %v439_v20 = vpop.permute.xlu0 %438 }
 0x37f   :  { %v441_v23 = vmul.f32 %v439_v20, %v433_v22 }
 0x381   :  { %443 = vrot.lane.b32.xlu2 %v441_v23, %s1797_s23 }
 0x389   :  { %384 = vperm.xlu2 %1499, %v382_v24  }
 0x3bb   :  { %v373_v29 = vpop.permute.xlu1 %372 }
 0x3bc   :  { %v2022_v30 = vadd.f32 %v373_v29, %v365_v28 }
 0x3be   :  { %1531 = vtanh.f32 %v2022_v30 }
 0x3c4   :  { %v1532_v31 = vpop.eup %1531 }
 0x3c5   :  { %378 = vrot.lane.b32.xlu0 %v1532_v31, %s1791_s1 }
 0x3cd   :  { %455 = vperm.xlu0 %1497, %v453_v32  }
 0x3db   :  { %v444_v33 = vpop.permute.xlu2 %443 }
 0x3dc   :  { %v2034_v34 = vadd.f32 %v444_v33, %v436_v9 }
 0x3de   :  { %1533 = vtanh.f32 %v2034_v34 }
 0x3e3   :  { %v2038_v36 = vpop.permute.xlu2 %384 }
 0x3e4   :  { %v1534_v35 = vpop.eup %1533  ;;  %vm386_vm10 = vcmp.eq.s32.totalorder %v2038_v36, 1 }
 0x3e5   :  { %449 = vrot.lane.b32.xlu1 %v1534_v35, %s1791_s1 }
 0x437   :  { %v379_v37 = vpop.permute.xlu0 %378 }
 0x438   :  { %v381_v38 = vmul.f32 %v379_v37, %v362_v54 }
 0x43a   :  { %v2044_v63 = vsel %vm386_vm10, %v381_v38, %v1981_v13 }
 0x43b   :  { %v463_v17 = vpack.c.bf16 %v2044_v63, %v2044_v63 }
 0x43d   :  { %v465_v39 = vunpack.c.l.b16 %v463_v17 }
 0x43f   :  { %v466_v40 = vpack.c.b16 %v465_v39, %v465_v39  ;;  %v2049_v41 = vpop.permute.xlu0 %455 }
 0x440   :  { %vm457_vm11 = vcmp.eq.s32.totalorder %v2049_v41, 1 }
 0x441   :  { %467 = vrot.lane.b32.xlu1 %v466_v40, %s1791_s1 }
 0x457   :  { %v450_v42 = vpop.permute.xlu1 %449 }
 0x458   :  { %v452_v43 = vmul.f32 %v450_v42, %v433_v22 }
 0x45a   :  { %v2055_v44 = vsel %vm457_vm11, %v452_v43, %v1991_v21 }
 0x45b   :  { %v534_v13 = vpack.c.bf16 %v2055_v44, %v2055_v44 }
 0x45d   :  { %v536_v45 = vunpack.c.l.b16 %v534_v13 }
 0x45f   :  { %v537_v46 = vpack.c.b16 %v536_v45, %v536_v45 }
 0x461   :  { %538 = vrot.lane.b32.xlu2 %v537_v46, %s1791_s1 }
 0x4b3   :  { %v468_v48 = vpop.permute.xlu1 %467 }
 0x4b4   :  { %v471_v49 = vsel %vm143_vm0, %v461_v47, %v468_v48  ;;  %v524_v48 = vsel %vm462_vm6, 1, %v1796_v27 }
 0x4b5   :  { %1432 = vmatmul.msk.bf16.vlgmr.msrb.gmra.mxu0 %vm171_vm1, %v471_v49  ;;  %v2084_v49 = vsel %vm386_vm10, %v2022_v30, %v2019_v25  ;;  %v2097_v25 = vsel %vm457_vm11, %v2034_v34, %v2031_v59 }
 0x4b6   :  { %1046 = vmatpush.bf16.msrb.mxu0 %v1875_v0 }
 0x4ba   :  { %1047 = vmatpush.bf16.msrb.mxu0 %v1881_v2 }
 0x4bb   :  { %v539_v21 = vpop.permute.xlu2 %538 }
 0x4bc   :  { %v542_v51 = vsel %vm143_vm0, %v532_v50, %v539_v21 }
 0x4bd   :  { %1434 = vmatmul.msk.bf16.vlgmr.msrb.gmra.mxu1 %vm171_vm1, %v542_v51 }
 0x4be   :  { %1048 = vmatpush.bf16.msrb.mxu0 %v1889_v4  ;;  %1117 = vmatpush.bf16.msrb.mxu1 %v1877_v1 }
 0x4c2   :  { %1049 = vmatpush.bf16.msrb.mxu0 %v1897_v6  ;;  %1118 = vmatpush.bf16.msrb.mxu1 %v1883_v3 }
 0x4c6   :  { %1119 = vmatpush.bf16.msrb.mxu1 %v1891_v5 }
 0x4ca   :  { %1120 = vmatpush.bf16.msrb.mxu1 %v1899_v7 }
 0x532   :  { %v483_v52 = vpop.f32.mrf.mxu0 }
 0x533   :  { %v484_v53 = vadd.f32 %v1938_v12, %v483_v52 }
 0x535   :  { %1535 = vtanh.f32 %v484_v53  ;;  %v1433_v62 = vmul.f32 -1.442695, %v484_v53  ;;  %v595_v53 = vsel %vm533_vm7, 1, %v1796_v27 }
 0x53a   :  { %v485_v54 = vpop.f32.mrf.mxu0  ;;  %v554_v56 = vpop.f32.mrf.mxu1 }
 0x53b   :  { %v1536_v57 = vpop.eup %1535  ;;  %v555_v58 = vadd.f32 %v1944_v16, %v554_v56 }
 0x53c   :  { %509 = vrot.lane.b32.xlu0 %v1536_v57, %s1791_s1 }
 0x53d   :  { %1537 = vtanh.f32 %v555_v58  ;;  %v1435_v8 = vmul.f32 -1.442695, %v555_v58 }
 0x53e   :  { %1539 = vpow2.f32 %v1433_v62 }
 0x53f   :  { %1541 = vpow2.f32 %v1435_v8 }
 0x542   :  { %v556_v60 = vpop.f32.mrf.mxu1 }
 0x543   :  { %v1538_v61 = vpop.eup %1537 }
 0x544   :  { %580 = vrot.lane.b32.xlu1 %v1538_v61, %s1791_s1  ;;  %v1540_v10 = vpop.eup %1539 }
 0x545   :  { %v490_v11 = vadd.f32 1.0, %v1540_v10  ;;  %v1542_v14 = vpop.eup %1541 }
 0x546   :  { %v561_v15 = vadd.f32 1.0, %v1542_v14 }
 0x547   :  { %1543 = vrcp.f32 %v490_v11  ;;  %v502_v31 = vand.u32 2147483648, %v490_v11  ;;  %vm496_vm13 = vweird.f32 %v490_v11  ;;  %v500_v32 = vand.u32 2147483647, %v490_v11 }
 0x548   :  { %1545 = vrcp.f32 %v561_v15  ;;  %v573_v40 = vand.u32 2147483648, %v561_v15  ;;  %vm567_vm3 = vweird.f32 %v561_v15  ;;  %v571_v42 = vand.u32 2147483647, %v561_v15 }
 0x549   :  { %v503_v35 = vor.u32 1.1754944e-38, %v502_v31  ;;  %vm501_vm15 = vcmp.eq.f32.partialorder %v500_v32, 8.507059e+37 }
 0x54a   :  { %v574_v13 = vor.u32 1.1754944e-38, %v573_v40  ;;  %vm572_vm5 = vcmp.eq.f32.partialorder %v571_v42, 8.507059e+37 }
 0x54d   :  { %v1544_v18 = vpop.eup %1543 }
 0x54e   :  { %v492_v19 = vmul.f32 %v1544_v18, %v490_v11  ;;  %v1546_v22 = vpop.eup %1545  ;;  %vm497_vm12 = vweird.f32 %v1544_v18 }
 0x54f   :  { %v563_v24 = vmul.f32 %v1546_v22, %v561_v15  ;;  %vm498_vm14 = vmor %vm496_vm13, %vm497_vm12  ;;  %vm568_vm2 = vweird.f32 %v1546_v22 }
 0x550   :  { %v493_v20 = vsub.f32 1.0, %v492_v19  ;;  %vm569_vm4 = vmor %vm567_vm3, %vm568_vm2 }
 0x551   :  { %v564_v29 = vsub.f32 1.0, %v563_v24 }
 0x552   :  { %v494_v23 = vmul.f32 %v1544_v18, %v493_v20 }
 0x553   :  { %v565_v33 = vmul.f32 %v1546_v22, %v564_v29 }
 0x554   :  { %v495_v28 = vadd.f32 %v1544_v18, %v494_v23 }
 0x555   :  { %v566_v39 = vadd.f32 %v1546_v22, %v565_v33 }
 0x556   :  { %v499_v9 = vsel %vm498_vm14, %v1544_v18, %v495_v28  ;;  %v603_v18 = vld [vmem:[#allocation2 + $0x3] sm:$0x1] }
 0x557   :  { %v504_v37 = vsel %vm501_vm15, %v503_v35, %v499_v9  ;;  %v570_v43 = vsel %vm569_vm4, %v1546_v22, %v566_v39  ;;  %vm604_vm4 = vcmp.gt.s32.totalorder %v1952_v26, 3 }
 0x558   :  { %v575_v46 = vsel %vm572_vm5, %v574_v13, %v570_v43  ;;  %v507_v50 = vmul.f32 %v504_v37, %v2084_v49  ;;  %vm675_vm5 = vcmp.gt.s32.totalorder %v1963_v55, 3 }
 0x559   :  { %v578_v30 = vmul.f32 %v575_v46, %v2097_v25 }
 0x5ae   :  { %v510_v38 = vpop.permute.xlu0 %509 }
 0x5af   :  { %v512_v17 = vmul.f32 %v510_v38, %v504_v37 }
 0x5b1   :  { %514 = vrot.lane.b32.xlu2 %v512_v17, %s1797_s23 }
 0x5b6   :  { %v581_v45 = vpop.permute.xlu1 %580 }
 0x5b7   :  { %v583_v47 = vmul.f32 %v581_v45, %v575_v46 }
 0x5b9   :  { %585 = vrot.lane.b32.xlu0 %v583_v47, %s1797_s23 }
 0x5c1   :  { %526 = vperm.xlu0 %1497, %v524_v48  }
 0x60b   :  { %v515_v21 = vpop.permute.xlu2 %514 }
 0x60c   :  { %v2087_v51 = vadd.f32 %v515_v21, %v507_v50 }
 0x60e   :  { %1547 = vtanh.f32 %v2087_v51 }
 0x614   :  { %v1548_v52 = vpop.eup %1547 }
 0x615   :  { %520 = vrot.lane.b32.xlu1 %v1548_v52, %s1791_s1 }
 0x61d   :  { %597 = vperm.xlu1 %1498, %v595_v53  }
 0x62b   :  { %v586_v36 = vpop.permute.xlu0 %585 }
 0x62c   :  { %v2100_v54 = vadd.f32 %v586_v36, %v578_v30 }
 0x62e   :  { %1549 = vtanh.f32 %v2100_v54 }
 0x633   :  { %v2104_v57 = vpop.permute.xlu0 %526 }
 0x634   :  { %v1550_v56 = vpop.eup %1549  ;;  %vm528_vm8 = vcmp.eq.s32.totalorder %v2104_v57, 1 }
 0x635   :  { %591 = vrot.lane.b32.xlu2 %v1550_v56, %s1791_s1 }
 0x687   :  { %v521_v58 = vpop.permute.xlu1 %520 }
 0x688   :  { %v523_v60 = vmul.f32 %v521_v58, %v504_v37 }
 0x68a   :  { %v2110_v59 = vsel %vm528_vm8, %v523_v60, %v2044_v63 }
 0x68b   :  { %v605_v34 = vpack.c.bf16 %v2110_v59, %v2110_v59 }
 0x68d   :  { %v607_v41 = vunpack.c.l.b16 %v605_v34 }
 0x68f   :  { %v2114_v61 = vpop.permute.xlu1 %597  ;;  %v592_v62 = vpop.permute.xlu2 %591  ;;  %v608_v8 = vpack.c.b16 %v607_v41, %v607_v41  ;;  %v666_v41 = vsel %vm604_vm4, 1, %v1796_v27 }
 0x690   :  { %vm599_vm9 = vcmp.eq.s32.totalorder %v2114_v61, 1  ;;  %v594_v10 = vmul.f32 %v592_v62, %v575_v46  ;;  %v2150_v62 = vsel %vm528_vm8, %v2087_v51, %v2084_v49  ;;  %v737_v49 = vsel %vm675_vm5, 1, %v1796_v27 }
 0x691   :  { %609 = vrot.lane.b32.xlu2 %v608_v8, %s1791_s1 }
 0x692   :  { %v2121_v11 = vsel %vm599_vm9, %v594_v10, %v2055_v44  ;;  %v674_v44 = vld [vmem:[#allocation5 + $0x3] sm:$0x1] }
 0x693   :  { %v676_v63 = vpack.c.bf16 %v2121_v11, %v2121_v11 }
 0x695   :  { %v678_v14 = vunpack.c.l.b16 %v676_v63 }
 0x697   :  { %v679_v15 = vpack.c.b16 %v678_v14, %v678_v14  ;;  %v2160_v14 = vsel %vm599_vm9, %v2100_v54, %v2097_v25 }
 0x699   :  { %680 = vrot.lane.b32.xlu0 %v679_v15, %s1791_s1 }
 0x6eb   :  { %v610_v19 = vpop.permute.xlu2 %609 }
 0x6ec   :  { %v613_v20 = vsel %vm143_vm0, %v603_v18, %v610_v19 }
 0x6ed   :  { %1436 = vmatmul.msk.bf16.vlgmr.msrb.gmra.mxu2 %vm171_vm1, %v613_v20 }
 0x6ee   :  { %1188 = vmatpush.bf16.msrb.mxu2 %v1875_v0 }
 0x6f2   :  { %1189 = vmatpush.bf16.msrb.mxu2 %v1881_v2 }
 0x6f6   :  { %1190 = vmatpush.bf16.msrb.mxu2 %v1889_v4 }
 0x6fa   :  { %1191 = vmatpush.bf16.msrb.mxu2 %v1897_v6 }
 0x70b   :  { %v681_v22 = vpop.permute.xlu0 %680 }
 0x70c   :  { %v684_v23 = vsel %vm143_vm0, %v674_v44, %v681_v22 }
 0x70d   :  { %1438 = vmatmul.msk.bf16.vlgmr.msrb.gmra.mxu3 %vm171_vm1, %v684_v23 }
 0x70e   :  { %1258 = vmatpush.bf16.msrb.mxu3 %v1877_v1 }
 0x712   :  { %1259 = vmatpush.bf16.msrb.mxu3 %v1883_v3 }
 0x716   :  { %1260 = vmatpush.bf16.msrb.mxu3 %v1891_v5 }
 0x71a   :  { %1261 = vmatpush.bf16.msrb.mxu3 %v1899_v7 }
 0x770   :  { %v625_v0 = vpop.f32.mrf.mxu2 }
 0x771   :  { %v626_v2 = vadd.f32 %v1938_v12, %v625_v0 }
 0x773   :  { %1551 = vtanh.f32 %v626_v2  ;;  %v1437_v3 = vmul.f32 -1.442695, %v626_v2 }
 0x778   :  { %v627_v4 = vpop.f32.mrf.mxu2 }
 0x779   :  { %v1552_v6 = vpop.eup %1551 }
 0x77a   :  { %651 = vrot.lane.b32.xlu1 %v1552_v6, %s1791_s1 }
 0x790   :  { %v696_v24 = vpop.f32.mrf.mxu3 }
 0x791   :  { %v697_v28 = vadd.f32 %v1944_v16, %v696_v24 }
 0x793   :  { %1553 = vtanh.f32 %v697_v28  ;;  %v1439_v5 = vmul.f32 -1.442695, %v697_v28 }
 0x794   :  { %1555 = vpow2.f32 %v1437_v3 }
 0x795   :  { %1557 = vpow2.f32 %v1439_v5  ;;  %v816_v5 = vld [vmem:[#allocation5 + $0x4] sm:$0x1] }
 0x798   :  { %v698_v29 = vpop.f32.mrf.mxu3 }
 0x799   :  { %v1554_v1 = vpop.eup %1553  ;;  %v745_v29 = vld [vmem:[#allocation2 + $0x4] sm:$0x1] }
 0x79a   :  { %722 = vrot.lane.b32.xlu2 %v1554_v1, %s1791_s1  ;;  %v1556_v7 = vpop.eup %1555 }
 0x79b   :  { %v632_v31 = vadd.f32 1.0, %v1556_v7  ;;  %v1558_v32 = vpop.eup %1557 }
 0x79c   :  { %v703_v9 = vadd.f32 1.0, %v1558_v32 }
 0x79d   :  { %1559 = vrcp.f32 %v632_v31  ;;  %v644_v43 = vand.u32 2147483648, %v632_v31  ;;  %vm638_vm11 = vweird.f32 %v632_v31  ;;  %v642_v13 = vand.u32 2147483647, %v632_v31 }
 0x79e   :  { %1561 = vrcp.f32 %v703_v9  ;;  %v715_v53 = vand.u32 2147483648, %v703_v9  ;;  %vm709_vm15 = vweird.f32 %v703_v9  ;;  %v713_v30 = vand.u32 2147483647, %v703_v9 }
 0x79f   :  { %v645_v47 = vor.u32 1.1754944e-38, %v644_v43  ;;  %vm643_vm13 = vcmp.eq.f32.partialorder %v642_v13, 8.507059e+37 }
 0x7a0   :  { %v716_v56 = vor.u32 1.1754944e-38, %v715_v53  ;;  %vm714_vm3 = vcmp.eq.f32.partialorder %v713_v30, 8.507059e+37 }
 0x7a3   :  { %v1560_v33 = vpop.eup %1559 }
 0x7a4   :  { %v634_v35 = vmul.f32 %v1560_v33, %v632_v31  ;;  %v1562_v38 = vpop.eup %1561  ;;  %vm639_vm10 = vweird.f32 %v1560_v33 }
 0x7a5   :  { %v705_v39 = vmul.f32 %v1562_v38, %v703_v9  ;;  %vm640_vm12 = vmor %vm638_vm11, %vm639_vm10  ;;  %vm710_vm14 = vweird.f32 %v1562_v38 }
 0x7a6   :  { %v635_v37 = vsub.f32 1.0, %v634_v35  ;;  %vm711_vm2 = vmor %vm709_vm15, %vm710_vm14 }
 0x7a7   :  { %v706_v42 = vsub.f32 1.0, %v705_v39 }
 0x7a8   :  { %v636_v17 = vmul.f32 %v1560_v33, %v635_v37 }
 0x7a9   :  { %v707_v46 = vmul.f32 %v1562_v38, %v706_v42 }
 0x7aa   :  { %v637_v40 = vadd.f32 %v1560_v33, %v636_v17 }
 0x7ab   :  { %v708_v52 = vadd.f32 %v1562_v38, %v707_v46 }
 0x7ac   :  { %v641_v45 = vsel %vm640_vm12, %v1560_v33, %v637_v40 }
 0x7ad   :  { %v646_v50 = vsel %vm643_vm13, %v645_v47, %v641_v45  ;;  %v712_v36 = vsel %vm711_vm2, %v1562_v38, %v708_v52  ;;  %vm746_vm2 = vcmp.gt.s32.totalorder %v1952_v26, 4 }
 0x7ae   :  { %v717_v60 = vsel %vm714_vm3, %v716_v56, %v712_v36  ;;  %v649_v8 = vmul.f32 %v646_v50, %v2150_v62  ;;  %vm817_vm3 = vcmp.gt.s32.totalorder %v1963_v55, 4 }
 0x7af   :  { %v720_v15 = vmul.f32 %v717_v60, %v2160_v14  ;;  %v879_v26 = vsel %vm817_vm3, 1, %v1796_v27 }
 0x7ec   :  { %v652_v48 = vpop.permute.xlu1 %651 }
 0x7ed   :  { %v654_v21 = vmul.f32 %v652_v48, %v646_v50 }
 0x7ef   :  { %656 = vrot.lane.b32.xlu0 %v654_v21, %s1797_s23 }
 0x7f4   :  { %v723_v58 = vpop.permute.xlu2 %722 }
 0x7f5   :  { %v725_v34 = vmul.f32 %v723_v58, %v717_v60 }
 0x7f7   :  { %727 = vrot.lane.b32.xlu1 %v725_v34, %s1797_s23 }
 0x7ff   :  { %668 = vperm.xlu1 %1498, %v666_v41  }
 0x861   :  { %v657_v10 = vpop.permute.xlu0 %656 }
 0x862   :  { %v2153_v63 = vadd.f32 %v657_v10, %v649_v8 }
 0x864   :  { %1563 = vtanh.f32 %v2153_v63 }
 0x869   :  { %v728_v18 = vpop.permute.xlu1 %727 }
 0x86a   :  { %v1564_v19 = vpop.eup %1563  ;;  %v2163_v57 = vadd.f32 %v728_v18, %v720_v15 }
 0x86b   :  { %662 = vrot.lane.b32.xlu2 %v1564_v19, %s1791_s1 }
 0x86c   :  { %1565 = vtanh.f32 %v2163_v57 }
 0x871   :  { %v2170_v25 = vpop.permute.xlu1 %668 }
 0x872   :  { %v1566_v51 = vpop.eup %1565  ;;  %vm670_vm6 = vcmp.eq.s32.totalorder %v2170_v25, 1 }
 0x873   :  { %733 = vrot.lane.b32.xlu0 %v1566_v51, %s1791_s1  ;;  %739 = vperm.xlu2 %1499, %v737_v49  }
 0x8c5   :  { %v663_v54 = vpop.permute.xlu2 %662 }
 0x8c6   :  { %v665_v61 = vmul.f32 %v663_v54, %v646_v50 }
 0x8c8   :  { %v2176_v20 = vsel %vm670_vm6, %v665_v61, %v2110_v59  ;;  %v808_v61 = vsel %vm746_vm2, 1, %v1796_v27 }
 0x8c9   :  { %v747_v44 = vpack.c.bf16 %v2176_v20, %v2176_v20 }
 0x8cb   :  { %v749_v22 = vunpack.c.l.b16 %v747_v44  ;;  %v2208_v44 = vsel %vm670_vm6, %v2153_v63, %v2150_v62 }
 0x8cd   :  { %v750_v23 = vpack.c.b16 %v749_v22, %v749_v22  ;;  %v2181_v0 = vpop.permute.xlu2 %739 }
 0x8ce   :  { %vm741_vm7 = vcmp.eq.s32.totalorder %v2181_v0, 1 }
 0x8cf   :  { %751 = vrot.lane.b32.xlu0 %v750_v23, %s1791_s1  ;;  %v2221_v62 = vsel %vm741_vm7, %v2163_v57, %v2160_v14 }
 0x8e5   :  { %v734_v2 = vpop.permute.xlu0 %733 }
 0x8e6   :  { %v736_v4 = vmul.f32 %v734_v2, %v717_v60 }
 0x8e8   :  { %v2187_v6 = vsel %vm741_vm7, %v736_v4, %v2121_v11 }
 0x8e9   :  { %v818_v59 = vpack.c.bf16 %v2187_v6, %v2187_v6 }
 0x8eb   :  { %v820_v24 = vunpack.c.l.b16 %v818_v59 }
 0x8ed   :  { %v821_v28 = vpack.c.b16 %v820_v24, %v820_v24 }
 0x8ef   :  { %822 = vrot.lane.b32.xlu1 %v821_v28, %s1791_s1 }
 0x941   :  { %v752_v1 = vpop.permute.xlu0 %751 }
 0x942   :  { %v755_v3 = vsel %vm143_vm0, %v745_v29, %v752_v1 }
 0x943   :  { %1440 = vmatmul.msk.bf16.vlgmr.msra.gmra.mxu0 %vm171_vm1, %v755_v3 }
 0x961   :  { %v823_v7 = vpop.permute.xlu1 %822 }
 0x962   :  { %v826_v31 = vsel %vm143_vm0, %v816_v5, %v823_v7 }
 0x963   :  { %1442 = vmatmul.msk.bf16.vlgmr.msra.gmra.mxu1 %vm171_vm1, %v826_v31 }
 0x9c0   :  { %v767_v11 = vpop.f32.mrf.mxu0 }
 0x9c1   :  { %v768_v32 = vadd.f32 %v1938_v12, %v767_v11 }
 0x9c3   :  { %1567 = vtanh.f32 %v768_v32  ;;  %v1441_v39 = vmul.f32 -1.442695, %v768_v32 }
 0x9c8   :  { %v769_v9 = vpop.f32.mrf.mxu0 }
 0x9c9   :  { %v1568_v33 = vpop.eup %1567  ;;  %v887_v9 = vld [vmem:[#allocation2 + $0x5] sm:$0x1] }
 0x9ca   :  { %793 = vrot.lane.b32.xlu2 %v1568_v33, %s1791_s1 }
 0x9e0   :  { %v838_v35 = vpop.f32.mrf.mxu1 }
 0x9e1   :  { %v839_v37 = vadd.f32 %v1944_v16, %v838_v35 }
 0x9e3   :  { %1569 = vtanh.f32 %v839_v37  ;;  %v1443_v30 = vmul.f32 -1.442695, %v839_v37  ;;  %v958_v37 = vld [vmem:[#allocation5 + $0x5] sm:$0x1] }
 0x9e4   :  { %1571 = vpow2.f32 %v1441_v39  ;;  %v2257_v39 = vld [vmem:[%s2427_s5] ss:$0 sm:$0xff] }
 0x9e8   :  { %v840_v38 = vpop.f32.mrf.mxu1 }
 0x9e9   :  { %v1570_v17 = vpop.eup %1569 }
 0x9ea   :  { %864 = vrot.lane.b32.xlu0 %v1570_v17, %s1791_s1  ;;  %v1572_v40 = vpop.eup %1571 }
 0x9eb   :  { %v774_v42 = vadd.f32 1.0, %v1572_v40 }
 0x9ed   :  { %1573 = vrcp.f32 %v774_v42  ;;  %v786_v47 = vand.u32 2147483648, %v774_v42  ;;  %vm780_vm9 = vweird.f32 %v774_v42  ;;  %v784_v48 = vand.u32 2147483647, %v774_v42 }
 0x9ee   :  { %1575 = vpow2.f32 %v1443_v30 }
 0x9ef   :  { %v787_v50 = vor.u32 1.1754944e-38, %v786_v47  ;;  %vm785_vm11 = vcmp.eq.f32.partialorder %v784_v48, 8.507059e+37 }
 0x9f3   :  { %v1574_v43 = vpop.eup %1573 }
 0x9f4   :  { %v776_v12 = vmul.f32 %v1574_v43, %v774_v42  ;;  %vm781_vm8 = vweird.f32 %v1574_v43  ;;  %v1576_v36 = vpop.eup %1575 }
 0x9f5   :  { %vm782_vm10 = vmor %vm780_vm9, %vm781_vm8  ;;  %v845_v56 = vadd.f32 1.0, %v1576_v36 }
 0x9f6   :  { %v777_v13 = vsub.f32 1.0, %v776_v12 }
 0x9f7   :  { %1577 = vrcp.f32 %v845_v56  ;;  %v857_v10 = vand.u32 2147483648, %v845_v56  ;;  %vm851_vm13 = vweird.f32 %v845_v56  ;;  %v855_v15 = vand.u32 2147483647, %v845_v56 }
 0x9f8   :  { %v778_v45 = vmul.f32 %v1574_v43, %v777_v13  ;;  %v2263_v13 = vld [vmem:[%s2429_s7] ss:$0 sm:$0xff] }
 0x9f9   :  { %v858_v19 = vor.u32 1.1754944e-38, %v857_v10  ;;  %vm856_vm15 = vcmp.eq.f32.partialorder %v855_v15, 8.507059e+37 }
 0x9fa   :  { %v779_v46 = vadd.f32 %v1574_v43, %v778_v45 }
 0x9fc   :  { %v783_v16 = vsel %vm782_vm10, %v1574_v43, %v779_v46 }
 0x9fd   :  { %v788_v52 = vsel %vm785_vm11, %v787_v50, %v783_v16  ;;  %v1578_v58 = vpop.eup %1577 }
 0x9fe   :  { %v847_v60 = vmul.f32 %v1578_v58, %v845_v56  ;;  %vm852_vm12 = vweird.f32 %v1578_v58  ;;  %v791_v22 = vmul.f32 %v788_v52, %v2208_v44 }
 0x9ff   :  { %vm853_vm14 = vmor %vm851_vm13, %vm852_vm12 }
 0xa00   :  { %v848_v34 = vsub.f32 1.0, %v847_v60 }
 0xa02   :  { %v849_v41 = vmul.f32 %v1578_v58, %v848_v34 }
 0xa04   :  { %v850_v8 = vadd.f32 %v1578_v58, %v849_v41 }
 0xa06   :  { %v854_v18 = vsel %vm853_vm14, %v1578_v58, %v850_v8 }
 0xa07   :  { %v859_v49 = vsel %vm856_vm15, %v858_v19, %v854_v18 }
 0xa08   :  { %v862_v63 = vmul.f32 %v859_v49, %v2221_v62 }
 0xa24   :  { %v794_v21 = vpop.permute.xlu2 %793 }
 0xa25   :  { %v796_v53 = vmul.f32 %v794_v21, %v788_v52 }
 0xa27   :  { %798 = vrot.lane.b32.xlu1 %v796_v53, %s1797_s23 }
 0xa5c   :  { %v865_v51 = vpop.permute.xlu0 %864 }
 0xa5d   :  { %v867_v54 = vmul.f32 %v865_v51, %v859_v49 }
 0xa5f   :  { %869 = vrot.lane.b32.xlu2 %v867_v54, %s1797_s23 }
 0xa67   :  { %810 = vperm.xlu2 %1499, %v808_v61  }
 0xa99   :  { %v799_v23 = vpop.permute.xlu1 %798 }
 0xa9a   :  { %v2211_v2 = vadd.f32 %v799_v23, %v791_v22 }
 0xa9c   :  { %1579 = vtanh.f32 %v2211_v2 }
 0xaa2   :  { %v1580_v4 = vpop.eup %1579 }
 0xaa3   :  { %804 = vrot.lane.b32.xlu0 %v1580_v4, %s1791_s1 }
 0xaab   :  { %881 = vperm.xlu0 %1497, %v879_v26  }
 0xab9   :  { %v870_v25 = vpop.permute.xlu2 %869 }
 0xaba   :  { %v2224_v59 = vadd.f32 %v870_v25, %v862_v63 }
 0xabc   :  { %1581 = vtanh.f32 %v2224_v59 }
 0xac1   :  { %v2228_v55 = vpop.permute.xlu2 %810 }
 0xac2   :  { %v1582_v24 = vpop.eup %1581  ;;  %vm812_vm4 = vcmp.eq.s32.totalorder %v2228_v55, 1 }
 0xac3   :  { %875 = vrot.lane.b32.xlu1 %v1582_v24, %s1791_s1 }
 0xb15   :  { %v805_v28 = vpop.permute.xlu0 %804 }
 0xb16   :  { %v807_v29 = vmul.f32 %v805_v28, %v788_v52 }
 0xb18   :  { %v2234_v14 = vsel %vm812_vm4, %v807_v29, %v2176_v20  ;;  %v2273_v29 = vld [vmem:[%s2424_s2] sm:$0x3] }
 0xb19   :  { %v889_v57 = vpack.c.bf16 %v2234_v14, %v2234_v14  ;;  %vm888_vm14 = vcmp.gt.s32.totalorder %v2273_v29, 5 }
 0xb1b   :  { %v891_v0 = vunpack.c.l.b16 %v889_v57  ;;  %v950_v57 = vsel %vm888_vm14, 1, %v1796_v27 }
 0xb1d   :  { %v892_v1 = vpack.c.b16 %v891_v0, %v891_v0  ;;  %v2239_v3 = vpop.permute.xlu0 %881  ;;  %v2281_v0 = vsel %vm812_vm4, %v2211_v2, %v2208_v44 }
 0xb1e   :  { %vm883_vm5 = vcmp.eq.s32.totalorder %v2239_v3, 1 }
 0xb1f   :  { %893 = vrot.lane.b32.xlu1 %v892_v1, %s1791_s1  ;;  %v2299_v2 = vsel %vm883_vm5, %v2224_v59, %v2221_v62 }
 0xb35   :  { %v876_v5 = vpop.permute.xlu1 %875 }
 0xb36   :  { %v878_v7 = vmul.f32 %v876_v5, %v859_v49 }
 0xb38   :  { %v2245_v31 = vsel %vm883_vm5, %v878_v7, %v2187_v6 }
 0xb39   :  { %v960_v20 = vpack.c.bf16 %v2245_v31, %v2245_v31 }
 0xb3b   :  { %v962_v11 = vunpack.c.l.b16 %v960_v20 }
 0xb3d   :  { %v963_v32 = vpack.c.b16 %v962_v11, %v962_v11  ;;  %v2291_v11 = vld [vmem:[%s2425_s3] sm:$0x3] }
 0xb3e   :  { %vm959_vm15 = vcmp.gt.s32.totalorder %v2291_v11, 5 }
 0xb3f   :  { %964 = vrot.lane.b32.xlu2 %v963_v32, %s1791_s1  ;;  %v1021_v44 = vsel %vm959_vm15, 1, %v1796_v27 }
 0xb91   :  { %v894_v33 = vpop.permute.xlu1 %893 }
 0xb92   :  { %v897_v35 = vsel %vm143_vm0, %v887_v9, %v894_v33 }
 0xb93   :  { %1444 = vmatmul.msk.bf16.vlgmr.msra.gmra.mxu2 %vm171_vm1, %v897_v35 }
 0xb99   :  { %v965_v38 = vpop.permute.xlu2 %964 }
 0xb9a   :  { %v968_v17 = vsel %vm143_vm0, %v958_v37, %v965_v38 }
 0xb9b   :  { %1446 = vmatmul.msk.bf16.vlgmr.msra.gmra.mxu3 %vm171_vm1, %v968_v17 }
 0xc16   :  { %v909_v6 = vpop.f32.mrf.mxu2 }
 0xc17   :  { %v910_v40 = vadd.f32 %v2257_v39, %v909_v6 }
 0xc19   :  { %1583 = vtanh.f32 %v910_v40  ;;  %v1445_v48 = vmul.f32 -1.442695, %v910_v40 }
 0xc1e   :  { %v911_v42 = vpop.f32.mrf.mxu2  ;;  %v980_v43 = vpop.f32.mrf.mxu3 }
 0xc1f   :  { %v1584_v12 = vpop.eup %1583  ;;  %v981_v45 = vadd.f32 %v2263_v13, %v980_v43 }
 0xc20   :  { %935 = vrot.lane.b32.xlu0 %v1584_v12, %s1791_s1 }
 0xc21   :  { %1585 = vtanh.f32 %v981_v45  ;;  %v1447_v16 = vmul.f32 -1.442695, %v981_v45 }
 0xc22   :  { %1587 = vpow2.f32 %v1445_v48 }
 0xc23   :  { %1589 = vpow2.f32 %v1447_v16  ;;  %v1100_v16 = vld [vmem:[#allocation5 + $0x6] sm:$0x1] }
 0xc26   :  { %v982_v46 = vpop.f32.mrf.mxu3 }
 0xc27   :  { %v1586_v47 = vpop.eup %1585  ;;  %v1029_v46 = vld [vmem:[#allocation2 + $0x6] sm:$0x1] }
 0xc28   :  { %1006 = vrot.lane.b32.xlu1 %v1586_v47, %s1791_s1  ;;  %v1588_v50 = vpop.eup %1587 }
 0xc29   :  { %v916_v21 = vadd.f32 1.0, %v1588_v50  ;;  %v1590_v52 = vpop.eup %1589 }
 0xc2a   :  { %v987_v53 = vadd.f32 1.0, %v1590_v52 }
 0xc2b   :  { %1591 = vrcp.f32 %v916_v21  ;;  %v928_v10 = vand.u32 2147483648, %v916_v21  ;;  %vm922_vm7 = vweird.f32 %v916_v21  ;;  %v926_v15 = vand.u32 2147483647, %v916_v21 }
 0xc2c   :  { %1593 = vrcp.f32 %v987_v53  ;;  %v999_v23 = vand.u32 2147483648, %v987_v53  ;;  %vm993_vm11 = vweird.f32 %v987_v53  ;;  %v997_v4 = vand.u32 2147483647, %v987_v53 }
 0xc2d   :  { %v929_v49 = vor.u32 1.1754944e-38, %v928_v10  ;;  %vm927_vm9 = vcmp.eq.f32.partialorder %v926_v15, 8.507059e+37 }
 0xc2e   :  { %v1000_v63 = vor.u32 1.1754944e-38, %v999_v23  ;;  %vm998_vm13 = vcmp.eq.f32.partialorder %v997_v4, 8.507059e+37 }
 0xc31   :  { %v1592_v30 = vpop.eup %1591 }
 0xc32   :  { %v918_v36 = vmul.f32 %v1592_v30, %v916_v21  ;;  %v1594_v58 = vpop.eup %1593  ;;  %vm923_vm6 = vweird.f32 %v1592_v30 }
 0xc33   :  { %v989_v34 = vmul.f32 %v1594_v58, %v987_v53  ;;  %vm924_vm8 = vmor %vm922_vm7, %vm923_vm6  ;;  %vm994_vm10 = vweird.f32 %v1594_v58 }
 0xc34   :  { %v919_v56 = vsub.f32 1.0, %v918_v36  ;;  %vm995_vm12 = vmor %vm993_vm11, %vm994_vm10 }
 0xc35   :  { %v990_v8 = vsub.f32 1.0, %v989_v34 }
 0xc36   :  { %v920_v60 = vmul.f32 %v1592_v30, %v919_v56 }
 0xc37   :  { %v991_v19 = vmul.f32 %v1594_v58, %v990_v8 }
 0xc38   :  { %v921_v41 = vadd.f32 %v1592_v30, %v920_v60 }
 0xc39   :  { %v992_v22 = vadd.f32 %v1594_v58, %v991_v19 }
 0xc3a   :  { %v925_v18 = vsel %vm924_vm8, %v1592_v30, %v921_v41 }
 0xc3b   :  { %v930_v51 = vsel %vm927_vm9, %v929_v49, %v925_v18  ;;  %v996_v26 = vsel %vm995_vm12, %v1594_v58, %v992_v22  ;;  %vm1030_vm12 = vcmp.gt.s32.totalorder %v2273_v29, 6 }
 0xc3c   :  { %v1001_v24 = vsel %vm998_vm13, %v1000_v63, %v996_v26  ;;  %v933_v1 = vmul.f32 %v930_v51, %v2281_v0  ;;  %vm1101_vm13 = vcmp.gt.s32.totalorder %v2291_v11, 6 }
 0xc3d   :  { %v1004_v55 = vmul.f32 %v1001_v24, %v2299_v2 }
 0xc92   :  { %v936_v54 = vpop.permute.xlu0 %935 }
 0xc93   :  { %v938_v61 = vmul.f32 %v936_v54, %v930_v51 }
 0xc95   :  { %940 = vrot.lane.b32.xlu2 %v938_v61, %s1797_s23 }
 0xc9a   :  { %v1007_v25 = vpop.permute.xlu1 %1006 }
 0xc9b   :  { %v1009_v28 = vmul.f32 %v1007_v25, %v1001_v24 }
 0xc9d   :  { %1011 = vrot.lane.b32.xlu0 %v1009_v28, %s1797_s23 }
 0xca5   :  { %952 = vperm.xlu0 %1497, %v950_v57  }
 0xcef   :  { %v941_v5 = vpop.permute.xlu2 %940 }
 0xcf0   :  { %v2284_v7 = vadd.f32 %v941_v5, %v933_v1 }
 0xcf2   :  { %1595 = vtanh.f32 %v2284_v7 }
 0xcf8   :  { %v1596_v20 = vpop.eup %1595 }
 0xcf9   :  { %946 = vrot.lane.b32.xlu1 %v1596_v20, %s1791_s1 }
 0xd01   :  { %1023 = vperm.xlu1 %1498, %v1021_v44  }
 0xd0f   :  { %v1012_v32 = vpop.permute.xlu0 %1011 }
 0xd10   :  { %v2302_v9 = vadd.f32 %v1012_v32, %v1004_v55 }
 0xd12   :  { %1597 = vtanh.f32 %v2302_v9 }
 0xd17   :  { %v2306_v35 = vpop.permute.xlu0 %952 }
 0xd18   :  { %v1598_v33 = vpop.eup %1597  ;;  %vm954_vm2 = vcmp.eq.s32.totalorder %v2306_v35, 1 }
 0xd19   :  { %1017 = vrot.lane.b32.xlu2 %v1598_v33, %s1791_s1 }
 0xd6b   :  { %v947_v37 = vpop.permute.xlu1 %946 }
 0xd6c   :  { %v949_v38 = vmul.f32 %v947_v37, %v930_v51 }
 0xd6e   :  { %v2312_v62 = vsel %vm954_vm2, %v949_v38, %v2234_v14 }
 0xd6f   :  { %v1031_v59 = vpack.c.bf16 %v2312_v62, %v2312_v62 }
 0xd71   :  { %v1033_v3 = vunpack.c.l.b16 %v1031_v59 }
 0xd73   :  { %v2316_v17 = vpop.permute.xlu1 %1023  ;;  %v1018_v6 = vpop.permute.xlu2 %1017  ;;  %v1034_v40 = vpack.c.b16 %v1033_v3, %v1033_v3  ;;  %v1092_v3 = vsel %vm1030_vm12, 1, %v1796_v27 }
 0xd74   :  { %vm1025_vm3 = vcmp.eq.s32.totalorder %v2316_v17, 1  ;;  %v1020_v42 = vmul.f32 %v1018_v6, %v1001_v24  ;;  %v2344_v6 = vsel %vm954_vm2, %v2284_v7, %v2281_v0  ;;  %v1163_v0 = vsel %vm1101_vm13, 1, %v1796_v27 }
 0xd75   :  { %1035 = vrot.lane.b32.xlu2 %v1034_v40, %s1791_s1 }
 0xd76   :  { %v2323_v43 = vsel %vm1025_vm3, %v1020_v42, %v2245_v31 }
 0xd77   :  { %v1102_v14 = vpack.c.bf16 %v2323_v43, %v2323_v43 }
 0xd79   :  { %v1104_v12 = vunpack.c.l.b16 %v1102_v14 }
 0xd7b   :  { %v1105_v45 = vpack.c.b16 %v1104_v12, %v1104_v12  ;;  %v2354_v12 = vsel %vm1025_vm3, %v2302_v9, %v2299_v2 }
 0xd7d   :  { %1106 = vrot.lane.b32.xlu0 %v1105_v45, %s1791_s1 }
 0xdcf   :  { %v1036_v47 = vpop.permute.xlu2 %1035 }
 0xdd0   :  { %v1039_v48 = vsel %vm143_vm0, %v1029_v46, %v1036_v47 }
 0xdd1   :  { %1448 = vmatmul.msk.bf16.vlgmr.msrb.gmra.mxu0 %vm171_vm1, %v1039_v48 }
 0xdef   :  { %v1107_v50 = vpop.permute.xlu0 %1106 }
 0xdf0   :  { %v1110_v21 = vsel %vm143_vm0, %v1100_v16, %v1107_v50 }
 0xdf1   :  { %1450 = vmatmul.msk.bf16.vlgmr.msrb.gmra.mxu1 %vm171_vm1, %v1110_v21 }
 0xe4e   :  { %v1051_v31 = vpop.f32.mrf.mxu0 }
 0xe4f   :  { %v1052_v52 = vadd.f32 %v2257_v39, %v1051_v31 }
 0xe51   :  { %1599 = vtanh.f32 %v1052_v52  ;;  %v1449_v34 = vmul.f32 -1.442695, %v1052_v52 }
 0xe56   :  { %v1053_v53 = vpop.f32.mrf.mxu0 }
 0xe57   :  { %v1600_v30 = vpop.eup %1599 }
 0xe58   :  { %1077 = vrot.lane.b32.xlu1 %v1600_v30, %s1791_s1 }
 0xe6e   :  { %v1122_v36 = vpop.f32.mrf.mxu1 }
 0xe6f   :  { %v1123_v56 = vadd.f32 %v2263_v13, %v1122_v36 }
 0xe71   :  { %1601 = vtanh.f32 %v1123_v56  ;;  %v1451_v41 = vmul.f32 -1.442695, %v1123_v56 }
 0xe72   :  { %1603 = vpow2.f32 %v1449_v34 }
 0xe73   :  { %1605 = vpow2.f32 %v1451_v41  ;;  %v1241_v41 = vld [vmem:[#allocation5 + $0x7] sm:$0x1] }
 0xe76   :  { %v1124_v58 = vpop.f32.mrf.mxu1 }
 0xe77   :  { %v1602_v60 = vpop.eup %1601  ;;  %v1171_v58 = vld [vmem:[#allocation2 + $0x7] sm:$0x1] }
 0xe78   :  { %1148 = vrot.lane.b32.xlu2 %v1602_v60, %s1791_s1  ;;  %v1604_v8 = vpop.eup %1603 }
 0xe79   :  { %v1058_v10 = vadd.f32 1.0, %v1604_v8  ;;  %v1606_v15 = vpop.eup %1605 }
 0xe7a   :  { %v1129_v18 = vadd.f32 1.0, %v1606_v15 }
 0xe7b   :  { %1607 = vrcp.f32 %v1058_v10  ;;  %v1070_v26 = vand.u32 2147483648, %v1058_v10  ;;  %vm1064_vm5 = vweird.f32 %v1058_v10  ;;  %v1068_v63 = vand.u32 2147483647, %v1058_v10 }
 0xe7c   :  { %1609 = vrcp.f32 %v1129_v18  ;;  %v1141_v44 = vand.u32 2147483648, %v1129_v18  ;;  %vm1135_vm9 = vweird.f32 %v1129_v18  ;;  %v1139_v55 = vand.u32 2147483647, %v1129_v18 }
 0xe7d   :  { %v1071_v28 = vor.u32 1.1754944e-38, %v1070_v26  ;;  %vm1069_vm7 = vcmp.eq.f32.partialorder %v1068_v63, 8.507059e+37 }
 0xe7e   :  { %v1142_v33 = vor.u32 1.1754944e-38, %v1141_v44  ;;  %vm1140_vm11 = vcmp.eq.f32.partialorder %v1139_v55, 8.507059e+37 }
 0xe81   :  { %v1608_v19 = vpop.eup %1607 }
 0xe82   :  { %v1060_v49 = vmul.f32 %v1608_v19, %v1058_v10  ;;  %v1610_v54 = vpop.eup %1609  ;;  %vm1065_vm4 = vweird.f32 %v1608_v19 }
 0xe83   :  { %v1131_v22 = vmul.f32 %v1610_v54, %v1129_v18  ;;  %vm1066_vm6 = vmor %vm1064_vm5, %vm1065_vm4  ;;  %vm1136_vm8 = vweird.f32 %v1610_v54 }
 0xe84   :  { %v1061_v51 = vsub.f32 1.0, %v1060_v49  ;;  %vm1137_vm10 = vmor %vm1135_vm9, %vm1136_vm8 }
 0xe85   :  { %v1132_v4 = vsub.f32 1.0, %v1131_v22 }
 0xe86   :  { %v1062_v61 = vmul.f32 %v1608_v19, %v1061_v51 }
 0xe87   :  { %v1133_v24 = vmul.f32 %v1610_v54, %v1132_v4 }
 0xe88   :  { %v1063_v23 = vadd.f32 %v1608_v19, %v1062_v61 }
 0xe89   :  { %v1134_v20 = vadd.f32 %v1610_v54, %v1133_v24 }
 0xe8a   :  { %v1067_v25 = vsel %vm1066_vm6, %v1608_v19, %v1063_v23 }
 0xe8b   :  { %v1072_v1 = vsel %vm1069_vm7, %v1071_v28, %v1067_v25  ;;  %v1138_v32 = vsel %vm1137_vm10, %v1610_v54, %v1134_v20  ;;  %vm1172_vm10 = vcmp.gt.s32.totalorder %v2273_v29, 7 }
 0xe8c   :  { %v1143_v38 = vsel %vm1140_vm11, %v1142_v33, %v1138_v32  ;;  %v1075_v40 = vmul.f32 %v1072_v1, %v2344_v6  ;;  %vm1242_vm11 = vcmp.gt.s32.totalorder %v2291_v11, 7 }
 0xe8d   :  { %v1146_v45 = vmul.f32 %v1143_v38, %v2354_v12 }
 0xeca   :  { %v1078_v57 = vpop.permute.xlu1 %1077 }
 0xecb   :  { %v1080_v5 = vmul.f32 %v1078_v57, %v1072_v1 }
 0xecd   :  { %1082 = vrot.lane.b32.xlu0 %v1080_v5, %s1797_s23 }
 0xed2   :  { %v1149_v37 = vpop.permute.xlu2 %1148 }
 0xed3   :  { %v1151_v59 = vmul.f32 %v1149_v37, %v1143_v38 }
 0xed5   :  { %1153 = vrot.lane.b32.xlu1 %v1151_v59, %s1797_s23 }
 0xedd   :  { %1094 = vperm.xlu1 %1498, %v1092_v3  }
 0xf3f   :  { %v1083_v42 = vpop.permute.xlu0 %1082 }
 0xf40   :  { %v2347_v14 = vadd.f32 %v1083_v42, %v1075_v40 }
 0xf42   :  { %1611 = vtanh.f32 %v2347_v14 }
 0xf47   :  { %v1154_v46 = vpop.permute.xlu1 %1153 }
 0xf48   :  { %v1612_v47 = vpop.eup %1611  ;;  %v2357_v35 = vadd.f32 %v1154_v46, %v1146_v45 }
 0xf49   :  { %1088 = vrot.lane.b32.xlu2 %v1612_v47, %s1791_s1 }
 0xf4a   :  { %1613 = vtanh.f32 %v2357_v35 }
 0xf4f   :  { %v2364_v2 = vpop.permute.xlu1 %1094 }
 0xf50   :  { %v1614_v7 = vpop.eup %1613  ;;  %vm1096_vm14 = vcmp.eq.s32.totalorder %v2364_v2, 1 }
 0xf51   :  { %1159 = vrot.lane.b32.xlu0 %v1614_v7, %s1791_s1  ;;  %1165 = vperm.xlu2 %1499, %v1163_v0  }
 0xfa3   :  { %v1089_v9 = vpop.permute.xlu2 %1088 }
 0xfa4   :  { %v1091_v17 = vmul.f32 %v1089_v9, %v1072_v1 }
 0xfa6   :  { %v2370_v48 = vsel %vm1096_vm14, %v1091_v17, %v2312_v62  ;;  %v1234_v17 = vsel %vm1172_vm10, 1, %v1796_v27 }
 0xfa7   :  { %v1173_v16 = vpack.c.bf16 %v2370_v48, %v2370_v48 }
 0xfa9   :  { %v1175_v50 = vunpack.c.l.b16 %v1173_v16  ;;  %v1098_v16 = vsel %vm1096_vm14, %v2347_v14, %v2344_v6 }
 0xfab   :  { %v1176_v21 = vpack.c.b16 %v1175_v50, %v1175_v50  ;;  %v2375_v31 = vpop.permute.xlu2 %1165 }
 0xfac   :  { %vm1167_vm15 = vcmp.eq.s32.totalorder %v2375_v31, 1 }
 0xfad   :  { %1177 = vrot.lane.b32.xlu0 %v1176_v21, %s1791_s1  ;;  %v1169_v29 = vsel %vm1167_vm15, %v2357_v35, %v2354_v12 }
 0xfc3   :  { %v1160_v52 = vpop.permute.xlu0 %1159 }
 0xfc4   :  { %v1162_v53 = vmul.f32 %v1160_v52, %v1143_v38 }
 0xfc6   :  { %v2381_v30 = vsel %vm1167_vm15, %v1162_v53, %v2323_v43 }
 0xfc7   :  { %v1243_v62 = vpack.c.bf16 %v2381_v30, %v2381_v30 }
 0xfc9   :  { %v1245_v36 = vunpack.c.l.b16 %v1243_v62  ;;  %v1304_v62 = vsel %vm1242_vm11, 1, %v1796_v27  ;;  %v1484_v27 = vld [vmem:[#allocation10 + $0x18] sm:$0xff] }
 0xfca   :  { %1363 = vmatpush.bf16.msra.mxu0 %v1484_v27 }
 0xfcb   :  { %v1246_v56 = vpack.c.b16 %v1245_v36, %v1245_v36 }
 0xfcd   :  { %1247 = vrot.lane.b32.xlu1 %v1246_v56, %s1791_s1 }
0x101f   :  { %v1178_v60 = vpop.permute.xlu0 %1177 }
0x1020   :  { %v1181_v34 = vsel %vm143_vm0, %v1171_v58, %v1178_v60 }
0x1021   :  { %1452 = vmatmul.msk.bf16.vlgmr.msrb.gmra.mxu2 %vm171_vm1, %v1181_v34  ;;  %v1483_v34 = vld [vmem:[#allocation10 + $0x10] sm:$0xff] }
0x1022   :  { %1364 = vmatpush.bf16.msra.mxu0 %v1483_v34 }
0x103f   :  { %v1248_v8 = vpop.permute.xlu1 %1247 }
0x1040   :  { %v1251_v10 = vsel %vm143_vm0, %v1241_v41, %v1248_v8  ;;  %v1482_v8 = vld [vmem:[#allocation10 + $0x8] sm:$0xff] }
0x1041   :  { %1454 = vmatmul.msk.bf16.vlgmr.msrb.gmra.mxu3 %vm171_vm1, %v1251_v10  ;;  %1365 = vmatpush.bf16.msra.mxu0 %v1482_v8  ;;  %v1481_v10 = vld [vmem:[#allocation10] sm:$0xff] }
0x1045   :  { %1366 = vmatpush.bf16.msra.mxu0 %v1481_v10 }
0x10a4   :  { %v1193_v43 = vpop.f32.mrf.mxu2 }
0x10a5   :  { %v1194_v15 = vadd.f32 %v2257_v39, %v1193_v43 }
0x10a7   :  { %1615 = vtanh.f32 %v1194_v15  ;;  %v1453_v22 = vmul.f32 -1.442695, %v1194_v15 }
0x10ac   :  { %v1195_v18 = vpop.f32.mrf.mxu2 }
0x10ad   :  { %v1616_v19 = vpop.eup %1615 }
0x10ae   :  { %1219 = vrot.lane.b32.xlu2 %v1616_v19, %s1791_s1  ;;  %v1502_v19 = vld [vmem:[%s2431_s9] ss:$0 sm:$0xff] }
0x10c4   :  { %v1263_v49 = vpop.f32.mrf.mxu3 }
0x10c5   :  { %v1264_v51 = vadd.f32 %v2263_v13, %v1263_v49 }
0x10c7   :  { %1617 = vtanh.f32 %v1264_v51  ;;  %v1455_v55 = vmul.f32 -1.442695, %v1264_v51 }
0x10c8   :  { %1619 = vpow2.f32 %v1453_v22 }
0x10cc   :  { %v1265_v54 = vpop.f32.mrf.mxu3 }
0x10cd   :  { %v1618_v61 = vpop.eup %1617 }
0x10ce   :  { %1289 = vrot.lane.b32.xlu0 %v1618_v61, %s1791_s1  ;;  %v1620_v23 = vpop.eup %1619 }
0x10cf   :  { %v1200_v4 = vadd.f32 1.0, %v1620_v23 }
0x10d1   :  { %1621 = vrcp.f32 %v1200_v4  ;;  %v1212_v28 = vand.u32 2147483648, %v1200_v4  ;;  %vm1206_vm3 = vweird.f32 %v1200_v4  ;;  %v1210_v57 = vand.u32 2147483647, %v1200_v4 }
0x10d2   :  { %1623 = vpow2.f32 %v1455_v55 }
0x10d3   :  { %v1213_v1 = vor.u32 1.1754944e-38, %v1212_v28  ;;  %vm1211_vm5 = vcmp.eq.f32.partialorder %v1210_v57, 8.507059e+37 }
0x10d7   :  { %v1622_v26 = vpop.eup %1621 }
0x10d8   :  { %v1202_v39 = vmul.f32 %v1622_v26, %v1200_v4  ;;  %vm1207_vm2 = vweird.f32 %v1622_v26  ;;  %v1624_v32 = vpop.eup %1623 }
0x10d9   :  { %vm1208_vm4 = vmor %vm1206_vm3, %vm1207_vm2  ;;  %v1270_v33 = vadd.f32 1.0, %v1624_v32 }
0x10da   :  { %v1203_v63 = vsub.f32 1.0, %v1202_v39 }
0x10db   :  { %1625 = vrcp.f32 %v1270_v33  ;;  %v1282_v42 = vand.u32 2147483648, %v1270_v33  ;;  %vm1276_vm7 = vweird.f32 %v1270_v33  ;;  %v1280_v45 = vand.u32 2147483647, %v1270_v33 }
0x10dc   :  { %v1204_v25 = vmul.f32 %v1622_v26, %v1203_v63 }
0x10dd   :  { %v1283_v47 = vor.u32 1.1754944e-38, %v1282_v42  ;;  %vm1281_vm9 = vcmp.eq.f32.partialorder %v1280_v45, 8.507059e+37 }
0x10de   :  { %v1205_v24 = vadd.f32 %v1622_v26, %v1204_v25 }
0x10e0   :  { %v1209_v13 = vsel %vm1208_vm4, %v1622_v26, %v1205_v24 }
0x10e1   :  { %v1214_v20 = vsel %vm1211_vm5, %v1213_v1, %v1209_v13  ;;  %v1626_v37 = vpop.eup %1625 }
0x10e2   :  { %v1272_v38 = vmul.f32 %v1626_v37, %v1270_v33  ;;  %vm1277_vm6 = vweird.f32 %v1626_v37  ;;  %v1217_v50 = vmul.f32 %v1214_v20, %v1098_v16 }
0x10e3   :  { %vm1278_vm8 = vmor %vm1276_vm7, %vm1277_vm6 }
0x10e4   :  { %v1273_v59 = vsub.f32 1.0, %v1272_v38 }
0x10e6   :  { %v1274_v3 = vmul.f32 %v1626_v37, %v1273_v59 }
0x10e8   :  { %v1275_v40 = vadd.f32 %v1626_v37, %v1274_v3 }
0x10ea   :  { %v1279_v46 = vsel %vm1278_vm8, %v1626_v37, %v1275_v40 }
0x10eb   :  { %v1284_v0 = vsel %vm1281_vm9, %v1283_v47, %v1279_v46 }
0x10ec   :  { %v1287_v36 = vmul.f32 %v1284_v0, %v1169_v29 }
0x1108   :  { %v1220_v5 = vpop.permute.xlu2 %1219 }
0x1109   :  { %v1222_v44 = vmul.f32 %v1220_v5, %v1214_v20 }
0x110b   :  { %1224 = vrot.lane.b32.xlu1 %v1222_v44, %s1797_s23 }
0x1140   :  { %v1290_v7 = vpop.permute.xlu0 %1289 }
0x1141   :  { %v1292_v9 = vmul.f32 %v1290_v7, %v1284_v0 }
0x1143   :  { %1294 = vrot.lane.b32.xlu2 %v1292_v9, %s1797_s23 }
0x114b   :  { %1236 = vperm.xlu2 %1499, %v1234_v17  }
0x117d   :  { %v1225_v21 = vpop.permute.xlu1 %1224 }
0x117e   :  { %v1227_v52 = vadd.f32 %v1225_v21, %v1217_v50 }
0x1180   :  { %1627 = vtanh.f32 %v1227_v52 }
0x1186   :  { %v1628_v53 = vpop.eup %1627 }
0x1187   :  { %1230 = vrot.lane.b32.xlu0 %v1628_v53, %s1791_s1 }
0x118f   :  { %1306 = vperm.xlu0 %1497, %v1304_v62  }
0x119d   :  { %v1295_v2 = vpop.permute.xlu2 %1294 }
0x119e   :  { %v1297_v6 = vadd.f32 %v1295_v2, %v1287_v36 }
0x11a0   :  { %1629 = vtanh.f32 %v1297_v6 }
0x11a5   :  { %v1237_v56 = vpop.permute.xlu2 %1236 }
0x11a6   :  { %v1630_v14 = vpop.eup %1629  ;;  %vm1238_vm12 = vcmp.eq.s32.totalorder %v1237_v56, 1 }
0x11a7   :  { %1300 = vrot.lane.b32.xlu1 %v1630_v14, %s1791_s1 }
0x11f9   :  { %v1231_v58 = vpop.permute.xlu0 %1230 }
0x11fa   :  { %v1233_v60 = vmul.f32 %v1231_v58, %v1214_v20 }
0x11fc   :  { %v1239_v11 = vsel %vm1238_vm12, %v1233_v60, %v2370_v48 }
0x11fd   :  { %1311 = vrot.lane.b32.xlu1 %v1239_v11, %s1797_s23 }
0x1201   :  { %v1307_v12 = vpop.permute.xlu0 %1306 }
0x1202   :  { %vm1308_vm13 = vcmp.eq.s32.totalorder %v1307_v12, 1 }
0x1219   :  { %v1301_v35 = vpop.permute.xlu1 %1300 }
0x121a   :  { %v1303_v31 = vmul.f32 %v1301_v35, %v1284_v0 }
0x121c   :  { %v1309_v41 = vsel %vm1308_vm13, %v1303_v31, %v2381_v30 }
0x121d   :  { %1315 = vrot.lane.b32.xlu2 %v1309_v41, %s1791_s1  ;;  %s1380_s1 = sshll.u32 %s2432_s10, 4  ;;  %s1381_s1 = int_to_ptr.hbm [resolvable:$true] %s1380_s1 }
0x126f   :  { %v1312_v43 = vpop.permute.xlu1 %1311 }
0x1277   :  { %v1316_v48 = vpop.permute.xlu2 %1315 }
0x1278   :  { %v1318_v15 = vsel %vm143_vm0, %v1312_v43, %v1316_v48 }
0x1279   :  { %v1319_v18 = vpack.c.bf16 %v1318_v15, %v1318_v15 }
0x127b   :  { %1472 = vmatmul.msk.bf16.vlgmr.msra.gmra.mxu0 %vm171_vm1, %v1319_v18 }
0x12f8   :  { %v1368_v30 = vpop.f32.mrf.mxu0 }
0x12f9   :  { %v1369_v49 = vadd.f32 %v1502_v19, %v1368_v30 }
0x12fb   :  { %1372 = vst [vmem:[#allocation11] sm:$0x3] %v1369_v49 }
0x12fc   :  { %1383 = dma.vmem_to_hbm [thread:$0]  %s1379_s6, 32, %s1381_s1, [#allocation4]  }
0x1300   :  { %v1370_v51 = vpop.f32.mrf.mxu0 }
0x1301   :  { %1785 = dma.done.wait [#allocation4], 32  }
0x1302   :  { %1786 = vsyncadd [#allocation4], 4294967264 }
0x1303   :  { %1388 = vsyncpa [#allocation3], 1 }
0x1304   :  { %1389 = vsyncpa [#allocation6], 1 }
0x1305   :  { %1390 = vsyncpa [#allocation9], 1 }
0x1306   :  { %1391 = vsyncpa [#allocation4], 1 }

</bundles_post_ra>
